<compile_context>
chip_gen: v5e
topology: v5e:2x2
jax: 0.10.0
libtpu: 0.0.40
codegen_flags: <defaults>
</compile_context>

<pallas_src>
import math

import jax
import jax.numpy as jnp
from jax.experimental import pallas as pl
from jax.experimental.pallas import tpu as pltpu

# ----- model hyper-parameters (small synthetic BERT) -----
B, S, H = 2, 8, 32          # batch, sequence, hidden
NUM_HEADS, HEAD_DIM = 2, 16
INTER = 64                  # FFN intermediate size
LAYERS = 2
VOCAB, MAX_POS, TYPES = 100, 64, 2
LN_EPS = 1e-12
SCALE = 1.0 / math.sqrt(HEAD_DIM)

MXU_DTYPE = jnp.bfloat16    # matmul operand dtype (f32 accumulation everywhere)

# row indices of the packed per-layer H-sized vectors (LAYERS, 6, H)
R_BO, R_LN1G, R_LN1B, R_B2, R_LN2G, R_LN2B = range(6)
# row indices of the packed misc vectors (3, H)
M_EMB_G, M_EMB_B, M_POOL_B = range(3)
# which projection inside the packed wqkv / qkv_b arrays
QIDX, KIDX, VIDX = range(3)


# ----------------------------- in-kernel helpers -----------------------------

def _layernorm(x, gamma, beta):
    mean = jnp.mean(x, axis=-1, keepdims=True)
    var = jnp.mean(jnp.square(x - mean), axis=-1, keepdims=True)
    return (x - mean) * jax.lax.rsqrt(var + LN_EPS) * gamma + beta


def _gelu(x):
    # tanh-approximation GELU (BERT "gelu_new"); exact erf-GELU differs only
    # in the 4th decimal at these magnitudes.
    c = math.sqrt(2.0 / math.pi)
    return 0.5 * x * (1.0 + jnp.tanh(c * (x + 0.044715 * x * x * x)))


def _dot(a, b):
    # bf16 MXU operands, f32 accumulation (BERT-inference-safe precision).
    return jnp.dot(a.astype(MXU_DTYPE), b.astype(MXU_DTYPE),
                   preferred_element_type=jnp.float32)


# ------------------------------- layer kernel --------------------------------
# One encoder layer per grid step.  Inputs (per step):
#   emb    : (B*S, H)                    embedding sum, pre-LayerNorm
#   bias   : (B, 1, S)                   additive attention bias (1-mask)*-1e9
#   misc   : (3, H)                      emb-LN gamma/beta, pooler bias
#   pool_w : (H, H)        bf16          pooler weight
#   wqkv   : (3*NH, H, Dh) bf16 (layer l) Q/K/V per-head weights
#   qkv_b  : (3*NH, 1, Dh)      (layer l) Q/K/V per-head biases
#   wo     : (NH, Dh, H)   bf16 (layer l) per-head output projections
#   vecs_h : (6, H)             (layer l) bo, ln1_g, ln1_b, b2, ln2_g, ln2_b
#   w1,b1,w2                    (layer l) FFN params
# Output:
#   pooled : (B, H) = tanh(W_pool @ h_CLS + b_pool), written on the last step.
# Scratch:
#   x_ref  : (B*S, H) f32 activations carried across layer steps.

def bert_layer_kernel(emb_ref, bias_ref, misc_ref, pool_w_ref,
                      wqkv_ref, qkvb_ref, wo_ref, vecs_ref,
                      w1_ref, b1_ref, w2_ref,
                      o_ref, x_ref):
    l = pl.program_id(0)
    last = pl.num_programs(0) - 1

    # ---- one-time init: embedding LayerNorm into the carried activation ----
    @pl.when(l == 0)
    def _init():
        misc = misc_ref[...]
        x_ref[...] = _layernorm(emb_ref[...],
                                misc[M_EMB_G:M_EMB_G + 1, :],
                                misc[M_EMB_B:M_EMB_B + 1, :])

    # ---- this layer's small packed vectors ---------------------------------
    vecs = vecs_ref[...]                                    # (6, H) f32
    bo = vecs[R_BO:R_BO + 1, :]
    ln1_g, ln1_b = vecs[R_LN1G:R_LN1G + 1, :], vecs[R_LN1B:R_LN1B + 1, :]
    b2 = vecs[R_B2:R_B2 + 1, :]
    ln2_g, ln2_b = vecs[R_LN2G:R_LN2G + 1, :], vecs[R_LN2B:R_LN2B + 1, :]

    def attention(x_q, x_kv, q_rows, bias_b):
        # Heads live on a leading *weight* axis -- no lane slicing of the
        # activations and no lane-axis concat; per-head outputs are summed
        # through their own (Dh, H) projection (== concat + dense).
        xq_bf = x_q.astype(MXU_DTYPE)
        xkv_bf = x_kv.astype(MXU_DTYPE)
        attn = None
        for h in range(NUM_HEADS):                          # static unroll (2)
            qh = (jnp.dot(xq_bf, wqkv_ref[QIDX * NUM_HEADS + h],
                          preferred_element_type=jnp.float32)
                  + qkvb_ref[QIDX * NUM_HEADS + h]) * SCALE  # fold 1/sqrt(d)
            kh = (jnp.dot(xkv_bf, wqkv_ref[KIDX * NUM_HEADS + h],
                          preferred_element_type=jnp.float32)
                  + qkvb_ref[KIDX * NUM_HEADS + h])
            vh = (jnp.dot(xkv_bf, wqkv_ref[VIDX * NUM_HEADS + h],
                          preferred_element_type=jnp.float32)
                  + qkvb_ref[VIDX * NUM_HEADS + h])
            qh = qh.reshape(B, q_rows, HEAD_DIM)
            kh = kh.reshape(B, S, HEAD_DIM)
            vh = vh.reshape(B, S, HEAD_DIM)
            s = jnp.einsum('bqd,bkd->bqk',
                           qh.astype(MXU_DTYPE), kh.astype(MXU_DTYPE),
                           preferred_element_type=jnp.float32)
            s = s + bias_b                                  # mask keys (pre-broadcast)
            s = s - jnp.max(s, axis=-1, keepdims=True)      # torch.softmax parity
            p = jnp.exp(s)
            # approx EUP reciprocal (~1e-4 rel err); use approx=False for
            # bit-level parity with the PyTorch softmax if required.
            p = p * pl.reciprocal(jnp.sum(p, axis=-1, keepdims=True), approx=True)
            ctx = jnp.einsum('bqk,bkd->bqd',
                             p.astype(MXU_DTYPE), vh.astype(MXU_DTYPE),
                             preferred_element_type=jnp.float32)
            oh = _dot(ctx.reshape(B * q_rows, HEAD_DIM), wo_ref[h])  # (B*q_rows, H)
            attn = oh if attn is None else attn + oh
        return attn + bo

    def ffn(h1):
        inter = _gelu(_dot(h1, w1_ref[...]) + b1_ref[...])
        return _layernorm(h1 + (_dot(inter, w2_ref[...]) + b2), ln2_g, ln2_b)

    # ---- all but the last layer: full-sequence update of x -----------------
    @pl.when(l < last)
    def _full_layer():
        x = x_ref[...]                                      # (B*S, H)
        # hoisted once per layer, OUTSIDE the head loop (no re-broadcast):
        bias_b = jnp.broadcast_to(bias_ref[...], (B, S, S))
        h1 = _layernorm(x + attention(x, x, S, bias_b), ln1_g, ln1_b)
        x_ref[...] = ffn(h1)

    # ---- last layer: only the CLS query rows feed the pooler ---------------
    @pl.when(l == last)
    def _last_layer_and_pool():
        x = x_ref[...]
        x_cls = x.reshape(B, S, H)[:, 0, :]                 # (B, H) CLS rows
        bias_b = bias_ref[...]                              # (B,1,S): exact shape
        h1 = _layernorm(x_cls + attention(x_cls, x, 1, bias_b), ln1_g, ln1_b)
        h2 = ffn(h1)
        misc = misc_ref[...]
        o_ref[...] = jnp.tanh(_dot(h2, pool_w_ref[...])
                              + misc[M_POOL_B:M_POOL_B + 1, :])


# --------------------------------- wrapper -----------------------------------

def _cost_estimate(in_bytes):
    mm = lambda m, k, n: 2 * m * k * n
    def layer(nq):                                   # nq = query rows
        proj = NUM_HEADS * (mm(nq, H, HEAD_DIM) + 2 * mm(B * S, H, HEAD_DIM)
                            + mm(nq, HEAD_DIM, H))
        attn = NUM_HEADS * 2 * mm(nq, HEAD_DIM, S)
        ff = mm(nq, H, INTER) + mm(nq, INTER, H)
        return proj + attn + ff
    flops = (LAYERS - 1) * layer(B * S) + layer(B) + mm(B, H, H)
    transc = ((LAYERS - 1) * (NUM_HEADS * B * S * S + B * S * INTER)
              + NUM_HEADS * B * S + B * INTER + B * H)
    return pl.CostEstimate(flops=flops, transcendentals=transc,
                           bytes_accessed=in_bytes + B * H * 4)


def bert_pooled_forward(emb2d, attn_bias, params):
    kernel_args = (
        emb2d, attn_bias, params["misc"], params["pool_w"],
        params["wqkv"], params["qkv_b"], params["wo"], params["vecs_h"],
        params["w1"], params["b1"], params["w2"],
    )
    in_specs = [
        # whole-array inputs (constant block index -> fetched once, reused)
        pl.BlockSpec((B * S, H), lambda l: (0, 0)),                 # emb
        pl.BlockSpec((B, 1, S), lambda l: (0, 0, 0)),               # attn bias
        pl.BlockSpec((3, H), lambda l: (0, 0)),                     # misc vecs
        pl.BlockSpec((H, H), lambda l: (0, 0)),                     # pool_w
        # per-layer weights streamed along the layer grid axis (double-buffered)
        pl.BlockSpec((pl.Squeezed(), 3 * NUM_HEADS, H, HEAD_DIM),
                     lambda l: (l, 0, 0, 0)),                       # wqkv
        pl.BlockSpec((pl.Squeezed(), 3 * NUM_HEADS, 1, HEAD_DIM),
                     lambda l: (l, 0, 0, 0)),                       # qkv_b
        pl.BlockSpec((pl.Squeezed(), NUM_HEADS, HEAD_DIM, H),
                     lambda l: (l, 0, 0, 0)),                       # wo
        pl.BlockSpec((pl.Squeezed(), 6, H), lambda l: (l, 0, 0)),   # vecs_h
        pl.BlockSpec((pl.Squeezed(), H, INTER), lambda l: (l, 0, 0)),   # w1
        pl.BlockSpec((pl.Squeezed(), 1, INTER), lambda l: (l, 0, 0)),   # b1
        pl.BlockSpec((pl.Squeezed(), INTER, H), lambda l: (l, 0, 0)),   # w2
    ]
    grid_spec = pltpu.PrefetchScalarGridSpec(
        num_scalar_prefetch=0,
        grid=(LAYERS,),
        in_specs=in_specs,
        out_specs=pl.BlockSpec((B, H), lambda l: (0, 0)),
        scratch_shapes=[pltpu.VMEM((B * S, H), jnp.float32)],       # carried x
    )
    in_bytes = sum(int(a.size) * a.dtype.itemsize for a in kernel_args)
    return pl.pallas_call(
        bert_layer_kernel,
        out_shape=jax.ShapeDtypeStruct((B, H), jnp.float32),
        grid_spec=grid_spec,
        compiler_params=pltpu.CompilerParams(
            # The layer axis is a serial, carried loop -> "arbitrary".
            # At real BERT sizes add a leading "parallel" batch/sequence-tile
            # axis so v7x's second TensorCore is used.
            dimension_semantics=("arbitrary",)),
        cost_estimate=_cost_estimate(in_bytes),
    )(*kernel_args)


@jax.jit
def bert_sentence_encoder(word_ids, mask, params):
    """Returns the BERT pooled output, like `_, x = self.bert(...)`."""
    # TODO(synk): token-embedding gather stays in XLA (no small Pallas gather here).
    emb = (jnp.take(params["word_emb"], word_ids, axis=0)
           + params["pos_emb"][None, :S, :]
           + params["type_emb"][0][None, None, :])                  # (B, S, H)
    emb2d = emb.reshape(B * S, H).astype(jnp.float32)
    attn_bias = ((1.0 - mask.astype(jnp.float32)) * (-1e9)).reshape(B, 1, S)
    return bert_pooled_forward(emb2d, attn_bias, params)


# ---------------------------- deterministic init ------------------------------

def init_params(key):
    # TODO(synk): BertModel.from_pretrained weight loading is replaced by
    # deterministic synthetic weights (no file / network access allowed here).
    ks = iter(jax.random.split(key, 12))
    rnd = lambda shape: 0.02 * jax.random.normal(next(ks), shape, jnp.float32)

    # packed per-layer H-sized vectors: bo, ln1_g, ln1_b, b2, ln2_g, ln2_b
    vecs_h = rnd((LAYERS, 6, H))
    vecs_h = vecs_h.at[:, R_LN1G].set(1.0).at[:, R_LN1B].set(0.0)
    vecs_h = vecs_h.at[:, R_LN2G].set(1.0).at[:, R_LN2B].set(0.0)
    # packed misc vectors: emb-LN gamma/beta, pooler bias
    misc = rnd((3, H)).at[M_EMB_G].set(1.0).at[M_EMB_B].set(0.0)

    return dict(
        word_emb=rnd((VOCAB, H)),
        pos_emb=rnd((MAX_POS, H)),
        type_emb=rnd((TYPES, H)),
        misc=misc,
        vecs_h=vecs_h,
        qkv_b=rnd((LAYERS, 3 * NUM_HEADS, 1, HEAD_DIM)),
        b1=rnd((LAYERS, 1, INTER)),
        # dense weights stored in bf16: MXU-native on v6e/v7x, halves DMA bytes
        wqkv=rnd((LAYERS, 3 * NUM_HEADS, H, HEAD_DIM)).astype(MXU_DTYPE),
        wo=rnd((LAYERS, NUM_HEADS, HEAD_DIM, H)).astype(MXU_DTYPE),
        w1=rnd((LAYERS, H, INTER)).astype(MXU_DTYPE),
        w2=rnd((LAYERS, INTER, H)).astype(MXU_DTYPE),
        pool_w=rnd((H, H)).astype(MXU_DTYPE),
    )


# ------------------------------------ main ------------------------------------

if __name__ == "__main__":
    key = jax.random.PRNGKey(0)
    k_param, k_ids = jax.random.split(key)

    params = init_params(k_param)

    # inputs['word'] : token ids, inputs['mask'] : attention mask
    word_ids = jax.random.randint(k_ids, (B, S), 0, VOCAB, dtype=jnp.int32)
    mask = jnp.ones((B, S), jnp.float32).at[1, 6:].set(0.0)  # pad last 2 of row 1

    pooled = bert_sentence_encoder(word_ids, mask, params)   # (B, H)
    jax.block_until_ready(pooled)

    assert pooled.shape == (B, H) and pooled.dtype == jnp.float32
    assert bool(jnp.all(jnp.isfinite(pooled)))
    print("KERNEL_OK")
</pallas_src>

<mosaic_0001>
module attributes {stable_mosaic.version = 11 : i64} {
  func.func @bert_layer_kernel(%arg0: i32, %arg1: memref<16x32xf32, #tpu.memory_space<vmem>>, %arg2: memref<2x1x8xf32, #tpu.memory_space<vmem>>, %arg3: memref<3x32xf32, #tpu.memory_space<vmem>>, %arg4: memref<32x32xbf16, #tpu.memory_space<vmem>>, %arg5: memref<1x6x32x16xbf16, #tpu.memory_space<vmem>>, %arg6: memref<1x6x1x16xf32, #tpu.memory_space<vmem>>, %arg7: memref<1x2x16x32xbf16, #tpu.memory_space<vmem>>, %arg8: memref<1x6x32xf32, #tpu.memory_space<vmem>>, %arg9: memref<1x32x64xbf16, #tpu.memory_space<vmem>>, %arg10: memref<1x1x64xf32, #tpu.memory_space<vmem>>, %arg11: memref<1x64x32xbf16, #tpu.memory_space<vmem>>, %arg12: memref<2x32xf32, #tpu.memory_space<vmem>>, %arg13: memref<16x32xf32, #tpu.memory_space<vmem>>) attributes {dimension_semantics = [#tpu.dimension_semantics<arbitrary>], iteration_bounds = array<i64: 2>, scalar_prefetch = 0 : i64, scratch_operands = 1 : i64, tpu.core_type = #tpu.core_type<tc>, window_params = [{pipeline_mode = #tpu.pipeline_mode<synchronous>, transform_indices = @transform_0, window_bounds = array<i64: 16, 32>}, {pipeline_mode = #tpu.pipeline_mode<synchronous>, transform_indices = @transform_1, window_bounds = array<i64: 2, 1, 8>}, {pipeline_mode = #tpu.pipeline_mode<synchronous>, transform_indices = @transform_2, window_bounds = array<i64: 3, 32>}, {pipeline_mode = #tpu.pipeline_mode<synchronous>, transform_indices = @transform_3, window_bounds = array<i64: 32, 32>}, {transform_indices = @transform_4, window_bounds = array<i64: 1, 6, 32, 16>}, {transform_indices = @transform_5, window_bounds = array<i64: 1, 6, 1, 16>}, {transform_indices = @transform_6, window_bounds = array<i64: 1, 2, 16, 32>}, {transform_indices = @transform_7, window_bounds = array<i64: 1, 6, 32>}, {transform_indices = @transform_8, window_bounds = array<i64: 1, 32, 64>}, {transform_indices = @transform_9, window_bounds = array<i64: 1, 1, 64>}, {transform_indices = @transform_10, window_bounds = array<i64: 1, 64, 32>}, {pipeline_mode = #tpu.pipeline_mode<synchronous>, transform_indices = @transform_11, window_bounds = array<i64: 2, 32>}]} {
    %c0_i32 = arith.constant 0 : i32
    %0 = arith.cmpi eq, %arg0, %c0_i32 : i32
    %1 = arith.extui %0 : i1 to i32
    %c0_i32_0 = arith.constant 0 : i32
    %2 = arith.cmpi ne, %1, %c0_i32_0 : i32
    scf.if %2 {
      %c0_6 = arith.constant 0 : index
      %c0_7 = arith.constant 0 : index
      %17 = vector.load %arg3[%c0_6, %c0_7] : memref<3x32xf32, #tpu.memory_space<vmem>>, vector<3x32xf32>
      %c0_8 = arith.constant 0 : index
      %c0_9 = arith.constant 0 : index
      %18 = vector.load %arg1[%c0_8, %c0_9] : memref<16x32xf32, #tpu.memory_space<vmem>>, vector<16x32xf32>
      %19 = vector.extract_strided_slice %17 {offsets = [0, 0], sizes = [1, 32], strides = [1, 1]} : vector<3x32xf32> to vector<1x32xf32>
      %20 = vector.extract_strided_slice %17 {offsets = [1, 0], sizes = [1, 32], strides = [1, 1]} : vector<3x32xf32> to vector<1x32xf32>
      %cst = arith.constant dense<0.000000e+00> : vector<16xf32>
      %21 = vector.multi_reduction <add>, %18, %cst [1] : vector<16x32xf32> to vector<16xf32>
      %22 = vector.shape_cast %21 : vector<16xf32> to vector<16x1xf32>
      %cst_10 = arith.constant 3.200000e+01 : f32
      %23 = vector.broadcast %cst_10 : f32 to vector<16x1xf32>
      %24 = arith.divf %22, %23 : vector<16x1xf32>
      %25 = vector.broadcast %24 : vector<16x1xf32> to vector<16x32xf32>
      %26 = arith.subf %18, %25 : vector<16x32xf32>
      %27 = arith.mulf %26, %26 : vector<16x32xf32>
      %cst_11 = arith.constant dense<0.000000e+00> : vector<16xf32>
      %28 = vector.multi_reduction <add>, %27, %cst_11 [1] : vector<16x32xf32> to vector<16xf32>
      %29 = vector.shape_cast %28 : vector<16xf32> to vector<16x1xf32>
      %cst_12 = arith.constant 3.200000e+01 : f32
      %30 = vector.broadcast %cst_12 : f32 to vector<16x1xf32>
      %31 = arith.divf %29, %30 : vector<16x1xf32>
      %32 = vector.broadcast %24 : vector<16x1xf32> to vector<16x32xf32>
      %33 = arith.subf %18, %32 : vector<16x32xf32>
      %cst_13 = arith.constant 9.99999996E-13 : f32
      %34 = vector.broadcast %cst_13 : f32 to vector<16x1xf32>
      %35 = arith.addf %31, %34 : vector<16x1xf32>
      %36 = math.rsqrt %35 : vector<16x1xf32>
      %37 = vector.broadcast %36 : vector<16x1xf32> to vector<16x32xf32>
      %38 = arith.mulf %33, %37 : vector<16x32xf32>
      %39 = vector.broadcast %19 : vector<1x32xf32> to vector<16x32xf32>
      %40 = arith.mulf %38, %39 : vector<16x32xf32>
      %41 = vector.broadcast %20 : vector<1x32xf32> to vector<16x32xf32>
      %42 = arith.addf %40, %41 : vector<16x32xf32>
      %c0_14 = arith.constant 0 : index
      %c0_15 = arith.constant 0 : index
      %43 = vector.load %arg13[%c0_14, %c0_15] : memref<16x32xf32, #tpu.memory_space<vmem>>, vector<16x32xf32>
      tpu.vector_store %arg13[%c0_14, %c0_15], %42 {strides = array<i32>} : memref<16x32xf32, #tpu.memory_space<vmem>>, vector<16x32xf32>,
    } else {
    }
    %c0 = arith.constant 0 : index
    %c0_1 = arith.constant 0 : index
    %c0_2 = arith.constant 0 : index
    %3 = vector.load %arg8[%c0, %c0_1, %c0_2] : memref<1x6x32xf32, #tpu.memory_space<vmem>>, vector<1x6x32xf32>
    %4 = vector.shape_cast %3 : vector<1x6x32xf32> to vector<6x32xf32>
    %5 = vector.extract_strided_slice %4 {offsets = [0, 0], sizes = [1, 32], strides = [1, 1]} : vector<6x32xf32> to vector<1x32xf32>
    %6 = vector.extract_strided_slice %4 {offsets = [1, 0], sizes = [1, 32], strides = [1, 1]} : vector<6x32xf32> to vector<1x32xf32>
    %7 = vector.extract_strided_slice %4 {offsets = [2, 0], sizes = [1, 32], strides = [1, 1]} : vector<6x32xf32> to vector<1x32xf32>
    %8 = vector.extract_strided_slice %4 {offsets = [3, 0], sizes = [1, 32], strides = [1, 1]} : vector<6x32xf32> to vector<1x32xf32>
    %9 = vector.extract_strided_slice %4 {offsets = [4, 0], sizes = [1, 32], strides = [1, 1]} : vector<6x32xf32> to vector<1x32xf32>
    %10 = vector.extract_strided_slice %4 {offsets = [5, 0], sizes = [1, 32], strides = [1, 1]} : vector<6x32xf32> to vector<1x32xf32>
    %c1_i32 = arith.constant 1 : i32
    %11 = arith.cmpi slt, %arg0, %c1_i32 : i32
    %12 = arith.extui %11 : i1 to i32
    %c0_i32_3 = arith.constant 0 : i32
    %13 = arith.cmpi ne, %12, %c0_i32_3 : i32
    scf.if %13 {
      %c0_6 = arith.constant 0 : index
      %c0_7 = arith.constant 0 : index
      %17 = vector.load %arg13[%c0_6, %c0_7] : memref<16x32xf32, #tpu.memory_space<vmem>>, vector<16x32xf32>
      %c0_8 = arith.constant 0 : index
      %c0_9 = arith.constant 0 : index
      %c0_10 = arith.constant 0 : index
      %18 = vector.load %arg2[%c0_8, %c0_9, %c0_10] : memref<2x1x8xf32, #tpu.memory_space<vmem>>, vector<2x1x8xf32>
      %19 = vector.shape_cast %18 : vector<2x1x8xf32> to vector<2x1x8xf32>
      %20 = vector.broadcast %19 : vector<2x1x8xf32> to vector<2x8x8xf32>
      %21 = arith.truncf %17 : vector<16x32xf32> to vector<16x32xbf16>
      %22 = arith.truncf %17 : vector<16x32xf32> to vector<16x32xbf16>
      %c0_11 = arith.constant 0 : index
      %c0_12 = arith.constant 0 : index
      %c0_13 = arith.constant 0 : index
      %c0_14 = arith.constant 0 : index
      %23 = vector.load %arg5[%c0_11, %c0_12, %c0_13, %c0_14] : memref<1x6x32x16xbf16, #tpu.memory_space<vmem>>, vector<1x1x32x16xbf16>
      %24 = vector.shape_cast %23 : vector<1x1x32x16xbf16> to vector<32x16xbf16>
      %cst = arith.constant dense<0.000000e+00> : vector<16x16xf32>
      %25 = tpu.matmul %21, %24, %cst {dimension_numbers = #tpu.dot_dimension_numbers<[1], [0], [0], [1], [0, 0, 1, 1], [], []>} : vector<16x32xbf16>, vector<32x16xbf16>, vector<16x16xf32> -> vector<16x16xf32>
      %c0_15 = arith.constant 0 : index
      %c0_16 = arith.constant 0 : index
      %c0_17 = arith.constant 0 : index
      %c0_18 = arith.constant 0 : index
      %26 = vector.load %arg6[%c0_15, %c0_16, %c0_17, %c0_18] : memref<1x6x1x16xf32, #tpu.memory_space<vmem>>, vector<1x1x1x16xf32>
      %27 = vector.shape_cast %26 : vector<1x1x1x16xf32> to vector<1x16xf32>
      %28 = vector.broadcast %27 : vector<1x16xf32> to vector<16x16xf32>
      %29 = arith.addf %25, %28 : vector<16x16xf32>
      %cst_19 = arith.constant 2.500000e-01 : f32
      %30 = vector.broadcast %cst_19 : f32 to vector<16x16xf32>
      %31 = arith.mulf %29, %30 : vector<16x16xf32>
      %c0_20 = arith.constant 0 : index
      %c2 = arith.constant 2 : index
      %c0_21 = arith.constant 0 : index
      %c0_22 = arith.constant 0 : index
      %32 = vector.load %arg5[%c0_20, %c2, %c0_21, %c0_22] : memref<1x6x32x16xbf16, #tpu.memory_space<vmem>>, vector<1x1x32x16xbf16>
      %33 = vector.shape_cast %32 : vector<1x1x32x16xbf16> to vector<32x16xbf16>
      %cst_23 = arith.constant dense<0.000000e+00> : vector<16x16xf32>
      %34 = tpu.matmul %22, %33, %cst_23 {dimension_numbers = #tpu.dot_dimension_numbers<[1], [0], [0], [1], [0, 0, 1, 1], [], []>} : vector<16x32xbf16>, vector<32x16xbf16>, vector<16x16xf32> -> vector<16x16xf32>
      %c0_24 = arith.constant 0 : index
      %c2_25 = arith.constant 2 : index
      %c0_26 = arith.constant 0 : index
      %c0_27 = arith.constant 0 : index
      %35 = vector.load %arg6[%c0_24, %c2_25, %c0_26, %c0_27] : memref<1x6x1x16xf32, #tpu.memory_space<vmem>>, vector<1x1x1x16xf32>
      %36 = vector.shape_cast %35 : vector<1x1x1x16xf32> to vector<1x16xf32>
      %37 = vector.broadcast %36 : vector<1x16xf32> to vector<16x16xf32>
      %38 = arith.addf %34, %37 : vector<16x16xf32>
      %c0_28 = arith.constant 0 : index
      %c4 = arith.constant 4 : index
      %c0_29 = arith.constant 0 : index
      %c0_30 = arith.constant 0 : index
      %39 = vector.load %arg5[%c0_28, %c4, %c0_29, %c0_30] : memref<1x6x32x16xbf16, #tpu.memory_space<vmem>>, vector<1x1x32x16xbf16>
      %40 = vector.shape_cast %39 : vector<1x1x32x16xbf16> to vector<32x16xbf16>
      %cst_31 = arith.constant dense<0.000000e+00> : vector<16x16xf32>
      %41 = tpu.matmul %22, %40, %cst_31 {dimension_numbers = #tpu.dot_dimension_numbers<[1], [0], [0], [1], [0, 0, 1, 1], [], []>} : vector<16x32xbf16>, vector<32x16xbf16>, vector<16x16xf32> -> vector<16x16xf32>
      %c0_32 = arith.constant 0 : index
      %c4_33 = arith.constant 4 : index
      %c0_34 = arith.constant 0 : index
      %c0_35 = arith.constant 0 : index
      %42 = vector.load %arg6[%c0_32, %c4_33, %c0_34, %c0_35] : memref<1x6x1x16xf32, #tpu.memory_space<vmem>>, vector<1x1x1x16xf32>
      %43 = vector.shape_cast %42 : vector<1x1x1x16xf32> to vector<1x16xf32>
      %44 = vector.broadcast %43 : vector<1x16xf32> to vector<16x16xf32>
      %45 = arith.addf %41, %44 : vector<16x16xf32>
      %46 = vector.shape_cast %31 : vector<16x16xf32> to vector<2x8x16xf32>
      %47 = vector.shape_cast %38 : vector<16x16xf32> to vector<2x8x16xf32>
      %48 = vector.shape_cast %45 : vector<16x16xf32> to vector<2x8x16xf32>
      %49 = arith.truncf %46 : vector<2x8x16xf32> to vector<2x8x16xbf16>
      %50 = arith.truncf %47 : vector<2x8x16xf32> to vector<2x8x16xbf16>
      "tpu.trace_start"() <{level = 10 : i32, message = "bqd,bkd->bqk"}> : () -> ()
      %cst_36 = arith.constant dense<0.000000e+00> : vector<2x8x8xf32>
      %51 = tpu.matmul %49, %50, %cst_36 {dimension_numbers = #tpu.dot_dimension_numbers<[2], [2], [1], [1], [0, 0, 0, 1, 1, 1], [0], [0]>} : vector<2x8x16xbf16>, vector<2x8x16xbf16>, vector<2x8x8xf32> -> vector<2x8x8xf32>
      "tpu.trace_stop"() : () -> ()
      %52 = arith.addf %51, %20 : vector<2x8x8xf32>
      %cst_37 = arith.constant dense<0xFF800000> : vector<2x8xf32>
      %53 = vector.multi_reduction <maximumf>, %52, %cst_37 [2] : vector<2x8x8xf32> to vector<2x8xf32>
      %54 = vector.shape_cast %53 : vector<2x8xf32> to vector<2x8x1xf32>
      %55 = vector.broadcast %54 : vector<2x8x1xf32> to vector<2x8x8xf32>
      %56 = arith.subf %52, %55 : vector<2x8x8xf32>
      %57 = math.exp %56 : vector<2x8x8xf32>
      %cst_38 = arith.constant dense<0.000000e+00> : vector<2x8xf32>
      %58 = vector.multi_reduction <add>, %57, %cst_38 [2] : vector<2x8x8xf32> to vector<2x8xf32>
      %59 = vector.shape_cast %58 : vector<2x8xf32> to vector<2x8x1xf32>
      %60 = tpu.reciprocal %59 {approx = true} : vector<2x8x1xf32> -> vector<2x8x1xf32>
      %61 = vector.broadcast %60 : vector<2x8x1xf32> to vector<2x8x8xf32>
      %62 = arith.mulf %57, %61 : vector<2x8x8xf32>
      %63 = arith.truncf %62 : vector<2x8x8xf32> to vector<2x8x8xbf16>
      %64 = arith.truncf %48 : vector<2x8x16xf32> to vector<2x8x16xbf16>
      "tpu.trace_start"() <{level = 10 : i32, message = "bqk,bkd->bqd"}> : () -> ()
      %cst_39 = arith.constant dense<0.000000e+00> : vector<2x8x16xf32>
      %65 = tpu.matmul %63, %64, %cst_39 {dimension_numbers = #tpu.dot_dimension_numbers<[2], [1], [1], [2], [0, 0, 0, 1, 1, 2], [0], [0]>} : vector<2x8x8xbf16>, vector<2x8x16xbf16>, vector<2x8x16xf32> -> vector<2x8x16xf32>
      "tpu.trace_stop"() : () -> ()
      %66 = vector.shape_cast %65 : vector<2x8x16xf32> to vector<16x16xf32>
      %c0_40 = arith.constant 0 : index
      %c0_41 = arith.constant 0 : index
      %c0_42 = arith.constant 0 : index
      %c0_43 = arith.constant 0 : index
      %67 = vector.load %arg7[%c0_40, %c0_41, %c0_42, %c0_43] : memref<1x2x16x32xbf16, #tpu.memory_space<vmem>>, vector<1x1x16x32xbf16>
      %68 = vector.shape_cast %67 : vector<1x1x16x32xbf16> to vector<16x32xbf16>
      %69 = arith.truncf %66 : vector<16x16xf32> to vector<16x16xbf16>
      %cst_44 = arith.constant dense<0.000000e+00> : vector<16x32xf32>
      %70 = tpu.matmul %69, %68, %cst_44 {dimension_numbers = #tpu.dot_dimension_numbers<[1], [0], [0], [1], [0, 0, 1, 1], [], []>} : vector<16x16xbf16>, vector<16x32xbf16>, vector<16x32xf32> -> vector<16x32xf32>
      %c0_45 = arith.constant 0 : index
      %c1 = arith.constant 1 : index
      %c0_46 = arith.constant 0 : index
      %c0_47 = arith.constant 0 : index
      %71 = vector.load %arg5[%c0_45, %c1, %c0_46, %c0_47] : memref<1x6x32x16xbf16, #tpu.memory_space<vmem>>, vector<1x1x32x16xbf16>
      %72 = vector.shape_cast %71 : vector<1x1x32x16xbf16> to vector<32x16xbf16>
      %cst_48 = arith.constant dense<0.000000e+00> : vector<16x16xf32>
      %73 = tpu.matmul %21, %72, %cst_48 {dimension_numbers = #tpu.dot_dimension_numbers<[1], [0], [0], [1], [0, 0, 1, 1], [], []>} : vector<16x32xbf16>, vector<32x16xbf16>, vector<16x16xf32> -> vector<16x16xf32>
      %c0_49 = arith.constant 0 : index
      %c1_50 = arith.constant 1 : index
      %c0_51 = arith.constant 0 : index
      %c0_52 = arith.constant 0 : index
      %74 = vector.load %arg6[%c0_49, %c1_50, %c0_51, %c0_52] : memref<1x6x1x16xf32, #tpu.memory_space<vmem>>, vector<1x1x1x16xf32>
      %75 = vector.shape_cast %74 : vector<1x1x1x16xf32> to vector<1x16xf32>
      %76 = vector.broadcast %75 : vector<1x16xf32> to vector<16x16xf32>
      %77 = arith.addf %73, %76 : vector<16x16xf32>
      %cst_53 = arith.constant 2.500000e-01 : f32
      %78 = vector.broadcast %cst_53 : f32 to vector<16x16xf32>
      %79 = arith.mulf %77, %78 : vector<16x16xf32>
      %c0_54 = arith.constant 0 : index
      %c3 = arith.constant 3 : index
      %c0_55 = arith.constant 0 : index
      %c0_56 = arith.constant 0 : index
      %80 = vector.load %arg5[%c0_54, %c3, %c0_55, %c0_56] : memref<1x6x32x16xbf16, #tpu.memory_space<vmem>>, vector<1x1x32x16xbf16>
      %81 = vector.shape_cast %80 : vector<1x1x32x16xbf16> to vector<32x16xbf16>
      %cst_57 = arith.constant dense<0.000000e+00> : vector<16x16xf32>
      %82 = tpu.matmul %22, %81, %cst_57 {dimension_numbers = #tpu.dot_dimension_numbers<[1], [0], [0], [1], [0, 0, 1, 1], [], []>} : vector<16x32xbf16>, vector<32x16xbf16>, vector<16x16xf32> -> vector<16x16xf32>
      %c0_58 = arith.constant 0 : index
      %c3_59 = arith.constant 3 : index
      %c0_60 = arith.constant 0 : index
      %c0_61 = arith.constant 0 : index
      %83 = vector.load %arg6[%c0_58, %c3_59, %c0_60, %c0_61] : memref<1x6x1x16xf32, #tpu.memory_space<vmem>>, vector<1x1x1x16xf32>
      %84 = vector.shape_cast %83 : vector<1x1x1x16xf32> to vector<1x16xf32>
      %85 = vector.broadcast %84 : vector<1x16xf32> to vector<16x16xf32>
      %86 = arith.addf %82, %85 : vector<16x16xf32>
      %c0_62 = arith.constant 0 : index
      %c5 = arith.constant 5 : index
      %c0_63 = arith.constant 0 : index
      %c0_64 = arith.constant 0 : index
      %87 = vector.load %arg5[%c0_62, %c5, %c0_63, %c0_64] : memref<1x6x32x16xbf16, #tpu.memory_space<vmem>>, vector<1x1x32x16xbf16>
      %88 = vector.shape_cast %87 : vector<1x1x32x16xbf16> to vector<32x16xbf16>
      %cst_65 = arith.constant dense<0.000000e+00> : vector<16x16xf32>
      %89 = tpu.matmul %22, %88, %cst_65 {dimension_numbers = #tpu.dot_dimension_numbers<[1], [0], [0], [1], [0, 0, 1, 1], [], []>} : vector<16x32xbf16>, vector<32x16xbf16>, vector<16x16xf32> -> vector<16x16xf32>
      %c0_66 = arith.constant 0 : index
      %c5_67 = arith.constant 5 : index
      %c0_68 = arith.constant 0 : index
      %c0_69 = arith.constant 0 : index
      %90 = vector.load %arg6[%c0_66, %c5_67, %c0_68, %c0_69] : memref<1x6x1x16xf32, #tpu.memory_space<vmem>>, vector<1x1x1x16xf32>
      %91 = vector.shape_cast %90 : vector<1x1x1x16xf32> to vector<1x16xf32>
      %92 = vector.broadcast %91 : vector<1x16xf32> to vector<16x16xf32>
      %93 = arith.addf %89, %92 : vector<16x16xf32>
      %94 = vector.shape_cast %79 : vector<16x16xf32> to vector<2x8x16xf32>
      %95 = vector.shape_cast %86 : vector<16x16xf32> to vector<2x8x16xf32>
      %96 = vector.shape_cast %93 : vector<16x16xf32> to vector<2x8x16xf32>
      %97 = arith.truncf %94 : vector<2x8x16xf32> to vector<2x8x16xbf16>
      %98 = arith.truncf %95 : vector<2x8x16xf32> to vector<2x8x16xbf16>
      "tpu.trace_start"() <{level = 10 : i32, message = "bqd,bkd->bqk"}> : () -> ()
      %cst_70 = arith.constant dense<0.000000e+00> : vector<2x8x8xf32>
      %99 = tpu.matmul %97, %98, %cst_70 {dimension_numbers = #tpu.dot_dimension_numbers<[2], [2], [1], [1], [0, 0, 0, 1, 1, 1], [0], [0]>} : vector<2x8x16xbf16>, vector<2x8x16xbf16>, vector<2x8x8xf32> -> vector<2x8x8xf32>
      "tpu.trace_stop"() : () -> ()
      %100 = arith.addf %99, %20 : vector<2x8x8xf32>
      %cst_71 = arith.constant dense<0xFF800000> : vector<2x8xf32>
      %101 = vector.multi_reduction <maximumf>, %100, %cst_71 [2] : vector<2x8x8xf32> to vector<2x8xf32>
      %102 = vector.shape_cast %101 : vector<2x8xf32> to vector<2x8x1xf32>
      %103 = vector.broadcast %102 : vector<2x8x1xf32> to vector<2x8x8xf32>
      %104 = arith.subf %100, %103 : vector<2x8x8xf32>
      %105 = math.exp %104 : vector<2x8x8xf32>
      %cst_72 = arith.constant dense<0.000000e+00> : vector<2x8xf32>
      %106 = vector.multi_reduction <add>, %105, %cst_72 [2] : vector<2x8x8xf32> to vector<2x8xf32>
      %107 = vector.shape_cast %106 : vector<2x8xf32> to vector<2x8x1xf32>
      %108 = tpu.reciprocal %107 {approx = true} : vector<2x8x1xf32> -> vector<2x8x1xf32>
      %109 = vector.broadcast %108 : vector<2x8x1xf32> to vector<2x8x8xf32>
      %110 = arith.mulf %105, %109 : vector<2x8x8xf32>
      %111 = arith.truncf %110 : vector<2x8x8xf32> to vector<2x8x8xbf16>
      %112 = arith.truncf %96 : vector<2x8x16xf32> to vector<2x8x16xbf16>
      "tpu.trace_start"() <{level = 10 : i32, message = "bqk,bkd->bqd"}> : () -> ()
      %cst_73 = arith.constant dense<0.000000e+00> : vector<2x8x16xf32>
      %113 = tpu.matmul %111, %112, %cst_73 {dimension_numbers = #tpu.dot_dimension_numbers<[2], [1], [1], [2], [0, 0, 0, 1, 1, 2], [0], [0]>} : vector<2x8x8xbf16>, vector<2x8x16xbf16>, vector<2x8x16xf32> -> vector<2x8x16xf32>
      "tpu.trace_stop"() : () -> ()
      %114 = vector.shape_cast %113 : vector<2x8x16xf32> to vector<16x16xf32>
      %c0_74 = arith.constant 0 : index
      %c1_75 = arith.constant 1 : index
      %c0_76 = arith.constant 0 : index
      %c0_77 = arith.constant 0 : index
      %115 = vector.load %arg7[%c0_74, %c1_75, %c0_76, %c0_77] : memref<1x2x16x32xbf16, #tpu.memory_space<vmem>>, vector<1x1x16x32xbf16>
      %116 = vector.shape_cast %115 : vector<1x1x16x32xbf16> to vector<16x32xbf16>
      %117 = arith.truncf %114 : vector<16x16xf32> to vector<16x16xbf16>
      %cst_78 = arith.constant dense<0.000000e+00> : vector<16x32xf32>
      %118 = tpu.matmul %117, %116, %cst_78 {dimension_numbers = #tpu.dot_dimension_numbers<[1], [0], [0], [1], [0, 0, 1, 1], [], []>} : vector<16x16xbf16>, vector<16x32xbf16>, vector<16x32xf32> -> vector<16x32xf32>
      %119 = arith.addf %70, %118 : vector<16x32xf32>
      %120 = vector.broadcast %5 : vector<1x32xf32> to vector<16x32xf32>
      %121 = arith.addf %119, %120 : vector<16x32xf32>
      %122 = arith.addf %17, %121 : vector<16x32xf32>
      %cst_79 = arith.constant dense<0.000000e+00> : vector<16xf32>
      %123 = vector.multi_reduction <add>, %122, %cst_79 [1] : vector<16x32xf32> to vector<16xf32>
      %124 = vector.shape_cast %123 : vector<16xf32> to vector<16x1xf32>
      %cst_80 = arith.constant 3.200000e+01 : f32
      %125 = vector.broadcast %cst_80 : f32 to vector<16x1xf32>
      %126 = arith.divf %124, %125 : vector<16x1xf32>
      %127 = vector.broadcast %126 : vector<16x1xf32> to vector<16x32xf32>
      %128 = arith.subf %122, %127 : vector<16x32xf32>
      %129 = arith.mulf %128, %128 : vector<16x32xf32>
      %cst_81 = arith.constant dense<0.000000e+00> : vector<16xf32>
      %130 = vector.multi_reduction <add>, %129, %cst_81 [1] : vector<16x32xf32> to vector<16xf32>
      %131 = vector.shape_cast %130 : vector<16xf32> to vector<16x1xf32>
      %cst_82 = arith.constant 3.200000e+01 : f32
      %132 = vector.broadcast %cst_82 : f32 to vector<16x1xf32>
      %133 = arith.divf %131, %132 : vector<16x1xf32>
      %134 = vector.broadcast %126 : vector<16x1xf32> to vector<16x32xf32>
      %135 = arith.subf %122, %134 : vector<16x32xf32>
      %cst_83 = arith.constant 9.99999996E-13 : f32
      %136 = vector.broadcast %cst_83 : f32 to vector<16x1xf32>
      %137 = arith.addf %133, %136 : vector<16x1xf32>
      %138 = math.rsqrt %137 : vector<16x1xf32>
      %139 = vector.broadcast %138 : vector<16x1xf32> to vector<16x32xf32>
      %140 = arith.mulf %135, %139 : vector<16x32xf32>
      %141 = vector.broadcast %6 : vector<1x32xf32> to vector<16x32xf32>
      %142 = arith.mulf %140, %141 : vector<16x32xf32>
      %143 = vector.broadcast %7 : vector<1x32xf32> to vector<16x32xf32>
      %144 = arith.addf %142, %143 : vector<16x32xf32>
      %c0_84 = arith.constant 0 : index
      %c0_85 = arith.constant 0 : index
      %c0_86 = arith.constant 0 : index
      %145 = vector.load %arg9[%c0_84, %c0_85, %c0_86] : memref<1x32x64xbf16, #tpu.memory_space<vmem>>, vector<1x32x64xbf16>
      %146 = vector.shape_cast %145 : vector<1x32x64xbf16> to vector<32x64xbf16>
      %147 = arith.truncf %144 : vector<16x32xf32> to vector<16x32xbf16>
      %cst_87 = arith.constant dense<0.000000e+00> : vector<16x64xf32>
      %148 = tpu.matmul %147, %146, %cst_87 {dimension_numbers = #tpu.dot_dimension_numbers<[1], [0], [0], [1], [0, 0, 1, 1], [], []>} : vector<16x32xbf16>, vector<32x64xbf16>, vector<16x64xf32> -> vector<16x64xf32>
      %c0_88 = arith.constant 0 : index
      %c0_89 = arith.constant 0 : index
      %c0_90 = arith.constant 0 : index
      %149 = vector.load %arg10[%c0_88, %c0_89, %c0_90] : memref<1x1x64xf32, #tpu.memory_space<vmem>>, vector<1x1x64xf32>
      %150 = vector.shape_cast %149 : vector<1x1x64xf32> to vector<1x64xf32>
      %151 = vector.broadcast %150 : vector<1x64xf32> to vector<16x64xf32>
      %152 = arith.addf %148, %151 : vector<16x64xf32>
      %cst_91 = arith.constant 5.000000e-01 : f32
      %153 = vector.broadcast %cst_91 : f32 to vector<16x64xf32>
      %154 = arith.mulf %153, %152 : vector<16x64xf32>
      %cst_92 = arith.constant 4.471500e-02 : f32
      %155 = vector.broadcast %cst_92 : f32 to vector<16x64xf32>
      %156 = arith.mulf %155, %152 : vector<16x64xf32>
      %157 = arith.mulf %156, %152 : vector<16x64xf32>
      %158 = arith.mulf %157, %152 : vector<16x64xf32>
      %159 = arith.addf %152, %158 : vector<16x64xf32>
      %cst_93 = arith.constant 0.797884583 : f32
      %160 = vector.broadcast %cst_93 : f32 to vector<16x64xf32>
      %161 = arith.mulf %160, %159 : vector<16x64xf32>
      %162 = math.tanh %161 : vector<16x64xf32>
      %cst_94 = arith.constant 1.000000e+00 : f32
      %163 = vector.broadcast %cst_94 : f32 to vector<16x64xf32>
      %164 = arith.addf %163, %162 : vector<16x64xf32>
      %165 = arith.mulf %154, %164 : vector<16x64xf32>
      %c0_95 = arith.constant 0 : index
      %c0_96 = arith.constant 0 : index
      %c0_97 = arith.constant 0 : index
      %166 = vector.load %arg11[%c0_95, %c0_96, %c0_97] : memref<1x64x32xbf16, #tpu.memory_space<vmem>>, vector<1x64x32xbf16>
      %167 = vector.shape_cast %166 : vector<1x64x32xbf16> to vector<64x32xbf16>
      %168 = arith.truncf %165 : vector<16x64xf32> to vector<16x64xbf16>
      %cst_98 = arith.constant dense<0.000000e+00> : vector<16x32xf32>
      %169 = tpu.matmul %168, %167, %cst_98 {dimension_numbers = #tpu.dot_dimension_numbers<[1], [0], [0], [1], [0, 0, 1, 1], [], []>} : vector<16x64xbf16>, vector<64x32xbf16>, vector<16x32xf32> -> vector<16x32xf32>
      %170 = vector.broadcast %8 : vector<1x32xf32> to vector<16x32xf32>
      %171 = arith.addf %169, %170 : vector<16x32xf32>
      %172 = arith.addf %144, %171 : vector<16x32xf32>
      %cst_99 = arith.constant dense<0.000000e+00> : vector<16xf32>
      %173 = vector.multi_reduction <add>, %172, %cst_99 [1] : vector<16x32xf32> to vector<16xf32>
      %174 = vector.shape_cast %173 : vector<16xf32> to vector<16x1xf32>
      %cst_100 = arith.constant 3.200000e+01 : f32
      %175 = vector.broadcast %cst_100 : f32 to vector<16x1xf32>
      %176 = arith.divf %174, %175 : vector<16x1xf32>
      %177 = vector.broadcast %176 : vector<16x1xf32> to vector<16x32xf32>
      %178 = arith.subf %172, %177 : vector<16x32xf32>
      %179 = arith.mulf %178, %178 : vector<16x32xf32>
      %cst_101 = arith.constant dense<0.000000e+00> : vector<16xf32>
      %180 = vector.multi_reduction <add>, %179, %cst_101 [1] : vector<16x32xf32> to vector<16xf32>
      %181 = vector.shape_cast %180 : vector<16xf32> to vector<16x1xf32>
      %cst_102 = arith.constant 3.200000e+01 : f32
      %182 = vector.broadcast %cst_102 : f32 to vector<16x1xf32>
      %183 = arith.divf %181, %182 : vector<16x1xf32>
      %184 = vector.broadcast %176 : vector<16x1xf32> to vector<16x32xf32>
      %185 = arith.subf %172, %184 : vector<16x32xf32>
      %cst_103 = arith.constant 9.99999996E-13 : f32
      %186 = vector.broadcast %cst_103 : f32 to vector<16x1xf32>
      %187 = arith.addf %183, %186 : vector<16x1xf32>
      %188 = math.rsqrt %187 : vector<16x1xf32>
      %189 = vector.broadcast %188 : vector<16x1xf32> to vector<16x32xf32>
      %190 = arith.mulf %185, %189 : vector<16x32xf32>
      %191 = vector.broadcast %9 : vector<1x32xf32> to vector<16x32xf32>
      %192 = arith.mulf %190, %191 : vector<16x32xf32>
      %193 = vector.broadcast %10 : vector<1x32xf32> to vector<16x32xf32>
      %194 = arith.addf %192, %193 : vector<16x32xf32>
      %c0_104 = arith.constant 0 : index
      %c0_105 = arith.constant 0 : index
      %195 = vector.load %arg13[%c0_104, %c0_105] : memref<16x32xf32, #tpu.memory_space<vmem>>, vector<16x32xf32>
      tpu.vector_store %arg13[%c0_104, %c0_105], %194 {strides = array<i32>} : memref<16x32xf32, #tpu.memory_space<vmem>>, vector<16x32xf32>,
    } else {
    }
    %c1_i32_4 = arith.constant 1 : i32
    %14 = arith.cmpi eq, %arg0, %c1_i32_4 : i32
    %15 = arith.extui %14 : i1 to i32
    %c0_i32_5 = arith.constant 0 : i32
    %16 = arith.cmpi ne, %15, %c0_i32_5 : i32
    scf.if %16 {
      %c0_6 = arith.constant 0 : index
      %c0_7 = arith.constant 0 : index
      %17 = vector.load %arg13[%c0_6, %c0_7] : memref<16x32xf32, #tpu.memory_space<vmem>>, vector<16x32xf32>
      %18 = vector.shape_cast %17 : vector<16x32xf32> to vector<2x8x32xf32>
      %19 = vector.extract_strided_slice %18 {offsets = [0, 0, 0], sizes = [2, 1, 32], strides = [1, 1, 1]} : vector<2x8x32xf32> to vector<2x1x32xf32>
      %20 = vector.shape_cast %19 : vector<2x1x32xf32> to vector<2x32xf32>
      %c0_8 = arith.constant 0 : index
      %c0_9 = arith.constant 0 : index
      %c0_10 = arith.constant 0 : index
      %21 = vector.load %arg2[%c0_8, %c0_9, %c0_10] : memref<2x1x8xf32, #tpu.memory_space<vmem>>, vector<2x1x8xf32>
      %22 = arith.truncf %20 : vector<2x32xf32> to vector<2x32xbf16>
      %23 = arith.truncf %17 : vector<16x32xf32> to vector<16x32xbf16>
      %c0_11 = arith.constant 0 : index
      %c0_12 = arith.constant 0 : index
      %c0_13 = arith.constant 0 : index
      %c0_14 = arith.constant 0 : index
      %24 = vector.load %arg5[%c0_11, %c0_12, %c0_13, %c0_14] : memref<1x6x32x16xbf16, #tpu.memory_space<vmem>>, vector<1x1x32x16xbf16>
      %25 = vector.shape_cast %24 : vector<1x1x32x16xbf16> to vector<32x16xbf16>
      %cst = arith.constant dense<0.000000e+00> : vector<2x16xf32>
      %26 = tpu.matmul %22, %25, %cst {dimension_numbers = #tpu.dot_dimension_numbers<[1], [0], [0], [1], [0, 0, 1, 1], [], []>} : vector<2x32xbf16>, vector<32x16xbf16>, vector<2x16xf32> -> vector<2x16xf32>
      %c0_15 = arith.constant 0 : index
      %c0_16 = arith.constant 0 : index
      %c0_17 = arith.constant 0 : index
      %c0_18 = arith.constant 0 : index
      %27 = vector.load %arg6[%c0_15, %c0_16, %c0_17, %c0_18] : memref<1x6x1x16xf32, #tpu.memory_space<vmem>>, vector<1x1x1x16xf32>
      %28 = vector.shape_cast %27 : vector<1x1x1x16xf32> to vector<1x16xf32>
      %29 = vector.broadcast %28 : vector<1x16xf32> to vector<2x16xf32>
      %30 = arith.addf %26, %29 : vector<2x16xf32>
      %cst_19 = arith.constant 2.500000e-01 : f32
      %31 = vector.broadcast %cst_19 : f32 to vector<2x16xf32>
      %32 = arith.mulf %30, %31 : vector<2x16xf32>
      %c0_20 = arith.constant 0 : index
      %c2 = arith.constant 2 : index
      %c0_21 = arith.constant 0 : index
      %c0_22 = arith.constant 0 : index
      %33 = vector.load %arg5[%c0_20, %c2, %c0_21, %c0_22] : memref<1x6x32x16xbf16, #tpu.memory_space<vmem>>, vector<1x1x32x16xbf16>
      %34 = vector.shape_cast %33 : vector<1x1x32x16xbf16> to vector<32x16xbf16>
      %cst_23 = arith.constant dense<0.000000e+00> : vector<16x16xf32>
      %35 = tpu.matmul %23, %34, %cst_23 {dimension_numbers = #tpu.dot_dimension_numbers<[1], [0], [0], [1], [0, 0, 1, 1], [], []>} : vector<16x32xbf16>, vector<32x16xbf16>, vector<16x16xf32> -> vector<16x16xf32>
      %c0_24 = arith.constant 0 : index
      %c2_25 = arith.constant 2 : index
      %c0_26 = arith.constant 0 : index
      %c0_27 = arith.constant 0 : index
      %36 = vector.load %arg6[%c0_24, %c2_25, %c0_26, %c0_27] : memref<1x6x1x16xf32, #tpu.memory_space<vmem>>, vector<1x1x1x16xf32>
      %37 = vector.shape_cast %36 : vector<1x1x1x16xf32> to vector<1x16xf32>
      %38 = vector.broadcast %37 : vector<1x16xf32> to vector<16x16xf32>
      %39 = arith.addf %35, %38 : vector<16x16xf32>
      %c0_28 = arith.constant 0 : index
      %c4 = arith.constant 4 : index
      %c0_29 = arith.constant 0 : index
      %c0_30 = arith.constant 0 : index
      %40 = vector.load %arg5[%c0_28, %c4, %c0_29, %c0_30] : memref<1x6x32x16xbf16, #tpu.memory_space<vmem>>, vector<1x1x32x16xbf16>
      %41 = vector.shape_cast %40 : vector<1x1x32x16xbf16> to vector<32x16xbf16>
      %cst_31 = arith.constant dense<0.000000e+00> : vector<16x16xf32>
      %42 = tpu.matmul %23, %41, %cst_31 {dimension_numbers = #tpu.dot_dimension_numbers<[1], [0], [0], [1], [0, 0, 1, 1], [], []>} : vector<16x32xbf16>, vector<32x16xbf16>, vector<16x16xf32> -> vector<16x16xf32>
      %c0_32 = arith.constant 0 : index
      %c4_33 = arith.constant 4 : index
      %c0_34 = arith.constant 0 : index
      %c0_35 = arith.constant 0 : index
      %43 = vector.load %arg6[%c0_32, %c4_33, %c0_34, %c0_35] : memref<1x6x1x16xf32, #tpu.memory_space<vmem>>, vector<1x1x1x16xf32>
      %44 = vector.shape_cast %43 : vector<1x1x1x16xf32> to vector<1x16xf32>
      %45 = vector.broadcast %44 : vector<1x16xf32> to vector<16x16xf32>
      %46 = arith.addf %42, %45 : vector<16x16xf32>
      %47 = vector.shape_cast %32 : vector<2x16xf32> to vector<2x1x16xf32>
      %48 = vector.shape_cast %39 : vector<16x16xf32> to vector<2x8x16xf32>
      %49 = vector.shape_cast %46 : vector<16x16xf32> to vector<2x8x16xf32>
      %50 = arith.truncf %47 : vector<2x1x16xf32> to vector<2x1x16xbf16>
      %51 = arith.truncf %48 : vector<2x8x16xf32> to vector<2x8x16xbf16>
      "tpu.trace_start"() <{level = 10 : i32, message = "bqd,bkd->bqk"}> : () -> ()
      %cst_36 = arith.constant dense<0.000000e+00> : vector<2x1x8xf32>
      %52 = tpu.matmul %50, %51, %cst_36 {dimension_numbers = #tpu.dot_dimension_numbers<[2], [2], [1], [1], [0, 0, 0, 1, 1, 1], [0], [0]>} : vector<2x1x16xbf16>, vector<2x8x16xbf16>, vector<2x1x8xf32> -> vector<2x1x8xf32>
      "tpu.trace_stop"() : () -> ()
      %53 = arith.addf %52, %21 : vector<2x1x8xf32>
      %cst_37 = arith.constant dense<0xFF800000> : vector<2x1xf32>
      %54 = vector.multi_reduction <maximumf>, %53, %cst_37 [2] : vector<2x1x8xf32> to vector<2x1xf32>
      %55 = vector.shape_cast %54 : vector<2x1xf32> to vector<2x1x1xf32>
      %56 = vector.broadcast %55 : vector<2x1x1xf32> to vector<2x1x8xf32>
      %57 = arith.subf %53, %56 : vector<2x1x8xf32>
      %58 = math.exp %57 : vector<2x1x8xf32>
      %cst_38 = arith.constant dense<0.000000e+00> : vector<2x1xf32>
      %59 = vector.multi_reduction <add>, %58, %cst_38 [2] : vector<2x1x8xf32> to vector<2x1xf32>
      %60 = vector.shape_cast %59 : vector<2x1xf32> to vector<2x1x1xf32>
      %61 = tpu.reciprocal %60 {approx = true} : vector<2x1x1xf32> -> vector<2x1x1xf32>
      %62 = vector.broadcast %61 : vector<2x1x1xf32> to vector<2x1x8xf32>
      %63 = arith.mulf %58, %62 : vector<2x1x8xf32>
      %64 = arith.truncf %63 : vector<2x1x8xf32> to vector<2x1x8xbf16>
      %65 = arith.truncf %49 : vector<2x8x16xf32> to vector<2x8x16xbf16>
      "tpu.trace_start"() <{level = 10 : i32, message = "bqk,bkd->bqd"}> : () -> ()
      %cst_39 = arith.constant dense<0.000000e+00> : vector<2x1x16xf32>
      %66 = tpu.matmul %64, %65, %cst_39 {dimension_numbers = #tpu.dot_dimension_numbers<[2], [1], [1], [2], [0, 0, 0, 1, 1, 2], [0], [0]>} : vector<2x1x8xbf16>, vector<2x8x16xbf16>, vector<2x1x16xf32> -> vector<2x1x16xf32>
      "tpu.trace_stop"() : () -> ()
      %67 = vector.shape_cast %66 : vector<2x1x16xf32> to vector<2x16xf32>
      %c0_40 = arith.constant 0 : index
      %c0_41 = arith.constant 0 : index
      %c0_42 = arith.constant 0 : index
      %c0_43 = arith.constant 0 : index
      %68 = vector.load %arg7[%c0_40, %c0_41, %c0_42, %c0_43] : memref<1x2x16x32xbf16, #tpu.memory_space<vmem>>, vector<1x1x16x32xbf16>
      %69 = vector.shape_cast %68 : vector<1x1x16x32xbf16> to vector<16x32xbf16>
      %70 = arith.truncf %67 : vector<2x16xf32> to vector<2x16xbf16>
      %cst_44 = arith.constant dense<0.000000e+00> : vector<2x32xf32>
      %71 = tpu.matmul %70, %69, %cst_44 {dimension_numbers = #tpu.dot_dimension_numbers<[1], [0], [0], [1], [0, 0, 1, 1], [], []>} : vector<2x16xbf16>, vector<16x32xbf16>, vector<2x32xf32> -> vector<2x32xf32>
      %c0_45 = arith.constant 0 : index
      %c1 = arith.constant 1 : index
      %c0_46 = arith.constant 0 : index
      %c0_47 = arith.constant 0 : index
      %72 = vector.load %arg5[%c0_45, %c1, %c0_46, %c0_47] : memref<1x6x32x16xbf16, #tpu.memory_space<vmem>>, vector<1x1x32x16xbf16>
      %73 = vector.shape_cast %72 : vector<1x1x32x16xbf16> to vector<32x16xbf16>
      %cst_48 = arith.constant dense<0.000000e+00> : vector<2x16xf32>
      %74 = tpu.matmul %22, %73, %cst_48 {dimension_numbers = #tpu.dot_dimension_numbers<[1], [0], [0], [1], [0, 0, 1, 1], [], []>} : vector<2x32xbf16>, vector<32x16xbf16>, vector<2x16xf32> -> vector<2x16xf32>
      %c0_49 = arith.constant 0 : index
      %c1_50 = arith.constant 1 : index
      %c0_51 = arith.constant 0 : index
      %c0_52 = arith.constant 0 : index
      %75 = vector.load %arg6[%c0_49, %c1_50, %c0_51, %c0_52] : memref<1x6x1x16xf32, #tpu.memory_space<vmem>>, vector<1x1x1x16xf32>
      %76 = vector.shape_cast %75 : vector<1x1x1x16xf32> to vector<1x16xf32>
      %77 = vector.broadcast %76 : vector<1x16xf32> to vector<2x16xf32>
      %78 = arith.addf %74, %77 : vector<2x16xf32>
      %cst_53 = arith.constant 2.500000e-01 : f32
      %79 = vector.broadcast %cst_53 : f32 to vector<2x16xf32>
      %80 = arith.mulf %78, %79 : vector<2x16xf32>
      %c0_54 = arith.constant 0 : index
      %c3 = arith.constant 3 : index
      %c0_55 = arith.constant 0 : index
      %c0_56 = arith.constant 0 : index
      %81 = vector.load %arg5[%c0_54, %c3, %c0_55, %c0_56] : memref<1x6x32x16xbf16, #tpu.memory_space<vmem>>, vector<1x1x32x16xbf16>
      %82 = vector.shape_cast %81 : vector<1x1x32x16xbf16> to vector<32x16xbf16>
      %cst_57 = arith.constant dense<0.000000e+00> : vector<16x16xf32>
      %83 = tpu.matmul %23, %82, %cst_57 {dimension_numbers = #tpu.dot_dimension_numbers<[1], [0], [0], [1], [0, 0, 1, 1], [], []>} : vector<16x32xbf16>, vector<32x16xbf16>, vector<16x16xf32> -> vector<16x16xf32>
      %c0_58 = arith.constant 0 : index
      %c3_59 = arith.constant 3 : index
      %c0_60 = arith.constant 0 : index
      %c0_61 = arith.constant 0 : index
      %84 = vector.load %arg6[%c0_58, %c3_59, %c0_60, %c0_61] : memref<1x6x1x16xf32, #tpu.memory_space<vmem>>, vector<1x1x1x16xf32>
      %85 = vector.shape_cast %84 : vector<1x1x1x16xf32> to vector<1x16xf32>
      %86 = vector.broadcast %85 : vector<1x16xf32> to vector<16x16xf32>
      %87 = arith.addf %83, %86 : vector<16x16xf32>
      %c0_62 = arith.constant 0 : index
      %c5 = arith.constant 5 : index
      %c0_63 = arith.constant 0 : index
      %c0_64 = arith.constant 0 : index
      %88 = vector.load %arg5[%c0_62, %c5, %c0_63, %c0_64] : memref<1x6x32x16xbf16, #tpu.memory_space<vmem>>, vector<1x1x32x16xbf16>
      %89 = vector.shape_cast %88 : vector<1x1x32x16xbf16> to vector<32x16xbf16>
      %cst_65 = arith.constant dense<0.000000e+00> : vector<16x16xf32>
      %90 = tpu.matmul %23, %89, %cst_65 {dimension_numbers = #tpu.dot_dimension_numbers<[1], [0], [0], [1], [0, 0, 1, 1], [], []>} : vector<16x32xbf16>, vector<32x16xbf16>, vector<16x16xf32> -> vector<16x16xf32>
      %c0_66 = arith.constant 0 : index
      %c5_67 = arith.constant 5 : index
      %c0_68 = arith.constant 0 : index
      %c0_69 = arith.constant 0 : index
      %91 = vector.load %arg6[%c0_66, %c5_67, %c0_68, %c0_69] : memref<1x6x1x16xf32, #tpu.memory_space<vmem>>, vector<1x1x1x16xf32>
      %92 = vector.shape_cast %91 : vector<1x1x1x16xf32> to vector<1x16xf32>
      %93 = vector.broadcast %92 : vector<1x16xf32> to vector<16x16xf32>
      %94 = arith.addf %90, %93 : vector<16x16xf32>
      %95 = vector.shape_cast %80 : vector<2x16xf32> to vector<2x1x16xf32>
      %96 = vector.shape_cast %87 : vector<16x16xf32> to vector<2x8x16xf32>
      %97 = vector.shape_cast %94 : vector<16x16xf32> to vector<2x8x16xf32>
      %98 = arith.truncf %95 : vector<2x1x16xf32> to vector<2x1x16xbf16>
      %99 = arith.truncf %96 : vector<2x8x16xf32> to vector<2x8x16xbf16>
      "tpu.trace_start"() <{level = 10 : i32, message = "bqd,bkd->bqk"}> : () -> ()
      %cst_70 = arith.constant dense<0.000000e+00> : vector<2x1x8xf32>
      %100 = tpu.matmul %98, %99, %cst_70 {dimension_numbers = #tpu.dot_dimension_numbers<[2], [2], [1], [1], [0, 0, 0, 1, 1, 1], [0], [0]>} : vector<2x1x16xbf16>, vector<2x8x16xbf16>, vector<2x1x8xf32> -> vector<2x1x8xf32>
      "tpu.trace_stop"() : () -> ()
      %101 = arith.addf %100, %21 : vector<2x1x8xf32>
      %cst_71 = arith.constant dense<0xFF800000> : vector<2x1xf32>
      %102 = vector.multi_reduction <maximumf>, %101, %cst_71 [2] : vector<2x1x8xf32> to vector<2x1xf32>
      %103 = vector.shape_cast %102 : vector<2x1xf32> to vector<2x1x1xf32>
      %104 = vector.broadcast %103 : vector<2x1x1xf32> to vector<2x1x8xf32>
      %105 = arith.subf %101, %104 : vector<2x1x8xf32>
      %106 = math.exp %105 : vector<2x1x8xf32>
      %cst_72 = arith.constant dense<0.000000e+00> : vector<2x1xf32>
      %107 = vector.multi_reduction <add>, %106, %cst_72 [2] : vector<2x1x8xf32> to vector<2x1xf32>
      %108 = vector.shape_cast %107 : vector<2x1xf32> to vector<2x1x1xf32>
      %109 = tpu.reciprocal %108 {approx = true} : vector<2x1x1xf32> -> vector<2x1x1xf32>
      %110 = vector.broadcast %109 : vector<2x1x1xf32> to vector<2x1x8xf32>
      %111 = arith.mulf %106, %110 : vector<2x1x8xf32>
      %112 = arith.truncf %111 : vector<2x1x8xf32> to vector<2x1x8xbf16>
      %113 = arith.truncf %97 : vector<2x8x16xf32> to vector<2x8x16xbf16>
      "tpu.trace_start"() <{level = 10 : i32, message = "bqk,bkd->bqd"}> : () -> ()
      %cst_73 = arith.constant dense<0.000000e+00> : vector<2x1x16xf32>
      %114 = tpu.matmul %112, %113, %cst_73 {dimension_numbers = #tpu.dot_dimension_numbers<[2], [1], [1], [2], [0, 0, 0, 1, 1, 2], [0], [0]>} : vector<2x1x8xbf16>, vector<2x8x16xbf16>, vector<2x1x16xf32> -> vector<2x1x16xf32>
      "tpu.trace_stop"() : () -> ()
      %115 = vector.shape_cast %114 : vector<2x1x16xf32> to vector<2x16xf32>
      %c0_74 = arith.constant 0 : index
      %c1_75 = arith.constant 1 : index
      %c0_76 = arith.constant 0 : index
      %c0_77 = arith.constant 0 : index
      %116 = vector.load %arg7[%c0_74, %c1_75, %c0_76, %c0_77] : memref<1x2x16x32xbf16, #tpu.memory_space<vmem>>, vector<1x1x16x32xbf16>
      %117 = vector.shape_cast %116 : vector<1x1x16x32xbf16> to vector<16x32xbf16>
      %118 = arith.truncf %115 : vector<2x16xf32> to vector<2x16xbf16>
      %cst_78 = arith.constant dense<0.000000e+00> : vector<2x32xf32>
      %119 = tpu.matmul %118, %117, %cst_78 {dimension_numbers = #tpu.dot_dimension_numbers<[1], [0], [0], [1], [0, 0, 1, 1], [], []>} : vector<2x16xbf16>, vector<16x32xbf16>, vector<2x32xf32> -> vector<2x32xf32>
      %120 = arith.addf %71, %119 : vector<2x32xf32>
      %121 = vector.broadcast %5 : vector<1x32xf32> to vector<2x32xf32>
      %122 = arith.addf %120, %121 : vector<2x32xf32>
      %123 = arith.addf %20, %122 : vector<2x32xf32>
      %cst_79 = arith.constant dense<0.000000e+00> : vector<2xf32>
      %124 = vector.multi_reduction <add>, %123, %cst_79 [1] : vector<2x32xf32> to vector<2xf32>
      %125 = vector.shape_cast %124 : vector<2xf32> to vector<2x1xf32>
      %cst_80 = arith.constant 3.200000e+01 : f32
      %126 = vector.broadcast %cst_80 : f32 to vector<2x1xf32>
      %127 = arith.divf %125, %126 : vector<2x1xf32>
      %128 = vector.broadcast %127 : vector<2x1xf32> to vector<2x32xf32>
      %129 = arith.subf %123, %128 : vector<2x32xf32>
      %130 = arith.mulf %129, %129 : vector<2x32xf32>
      %cst_81 = arith.constant dense<0.000000e+00> : vector<2xf32>
      %131 = vector.multi_reduction <add>, %130, %cst_81 [1] : vector<2x32xf32> to vector<2xf32>
      %132 = vector.shape_cast %131 : vector<2xf32> to vector<2x1xf32>
      %cst_82 = arith.constant 3.200000e+01 : f32
      %133 = vector.broadcast %cst_82 : f32 to vector<2x1xf32>
      %134 = arith.divf %132, %133 : vector<2x1xf32>
      %135 = vector.broadcast %127 : vector<2x1xf32> to vector<2x32xf32>
      %136 = arith.subf %123, %135 : vector<2x32xf32>
      %cst_83 = arith.constant 9.99999996E-13 : f32
      %137 = vector.broadcast %cst_83 : f32 to vector<2x1xf32>
      %138 = arith.addf %134, %137 : vector<2x1xf32>
      %139 = math.rsqrt %138 : vector<2x1xf32>
      %140 = vector.broadcast %139 : vector<2x1xf32> to vector<2x32xf32>
      %141 = arith.mulf %136, %140 : vector<2x32xf32>
      %142 = vector.broadcast %6 : vector<1x32xf32> to vector<2x32xf32>
      %143 = arith.mulf %141, %142 : vector<2x32xf32>
      %144 = vector.broadcast %7 : vector<1x32xf32> to vector<2x32xf32>
      %145 = arith.addf %143, %144 : vector<2x32xf32>
      %c0_84 = arith.constant 0 : index
      %c0_85 = arith.constant 0 : index
      %c0_86 = arith.constant 0 : index
      %146 = vector.load %arg9[%c0_84, %c0_85, %c0_86] : memref<1x32x64xbf16, #tpu.memory_space<vmem>>, vector<1x32x64xbf16>
      %147 = vector.shape_cast %146 : vector<1x32x64xbf16> to vector<32x64xbf16>
      %148 = arith.truncf %145 : vector<2x32xf32> to vector<2x32xbf16>
      %cst_87 = arith.constant dense<0.000000e+00> : vector<2x64xf32>
      %149 = tpu.matmul %148, %147, %cst_87 {dimension_numbers = #tpu.dot_dimension_numbers<[1], [0], [0], [1], [0, 0, 1, 1], [], []>} : vector<2x32xbf16>, vector<32x64xbf16>, vector<2x64xf32> -> vector<2x64xf32>
      %c0_88 = arith.constant 0 : index
      %c0_89 = arith.constant 0 : index
      %c0_90 = arith.constant 0 : index
      %150 = vector.load %arg10[%c0_88, %c0_89, %c0_90] : memref<1x1x64xf32, #tpu.memory_space<vmem>>, vector<1x1x64xf32>
      %151 = vector.shape_cast %150 : vector<1x1x64xf32> to vector<1x64xf32>
      %152 = vector.broadcast %151 : vector<1x64xf32> to vector<2x64xf32>
      %153 = arith.addf %149, %152 : vector<2x64xf32>
      %cst_91 = arith.constant 5.000000e-01 : f32
      %154 = vector.broadcast %cst_91 : f32 to vector<2x64xf32>
      %155 = arith.mulf %154, %153 : vector<2x64xf32>
      %cst_92 = arith.constant 4.471500e-02 : f32
      %156 = vector.broadcast %cst_92 : f32 to vector<2x64xf32>
      %157 = arith.mulf %156, %153 : vector<2x64xf32>
      %158 = arith.mulf %157, %153 : vector<2x64xf32>
      %159 = arith.mulf %158, %153 : vector<2x64xf32>
      %160 = arith.addf %153, %159 : vector<2x64xf32>
      %cst_93 = arith.constant 0.797884583 : f32
      %161 = vector.broadcast %cst_93 : f32 to vector<2x64xf32>
      %162 = arith.mulf %161, %160 : vector<2x64xf32>
      %163 = math.tanh %162 : vector<2x64xf32>
      %cst_94 = arith.constant 1.000000e+00 : f32
      %164 = vector.broadcast %cst_94 : f32 to vector<2x64xf32>
      %165 = arith.addf %164, %163 : vector<2x64xf32>
      %166 = arith.mulf %155, %165 : vector<2x64xf32>
      %c0_95 = arith.constant 0 : index
      %c0_96 = arith.constant 0 : index
      %c0_97 = arith.constant 0 : index
      %167 = vector.load %arg11[%c0_95, %c0_96, %c0_97] : memref<1x64x32xbf16, #tpu.memory_space<vmem>>, vector<1x64x32xbf16>
      %168 = vector.shape_cast %167 : vector<1x64x32xbf16> to vector<64x32xbf16>
      %169 = arith.truncf %166 : vector<2x64xf32> to vector<2x64xbf16>
      %cst_98 = arith.constant dense<0.000000e+00> : vector<2x32xf32>
      %170 = tpu.matmul %169, %168, %cst_98 {dimension_numbers = #tpu.dot_dimension_numbers<[1], [0], [0], [1], [0, 0, 1, 1], [], []>} : vector<2x64xbf16>, vector<64x32xbf16>, vector<2x32xf32> -> vector<2x32xf32>
      %171 = vector.broadcast %8 : vector<1x32xf32> to vector<2x32xf32>
      %172 = arith.addf %170, %171 : vector<2x32xf32>
      %173 = arith.addf %145, %172 : vector<2x32xf32>
      %cst_99 = arith.constant dense<0.000000e+00> : vector<2xf32>
      %174 = vector.multi_reduction <add>, %173, %cst_99 [1] : vector<2x32xf32> to vector<2xf32>
      %175 = vector.shape_cast %174 : vector<2xf32> to vector<2x1xf32>
      %cst_100 = arith.constant 3.200000e+01 : f32
      %176 = vector.broadcast %cst_100 : f32 to vector<2x1xf32>
      %177 = arith.divf %175, %176 : vector<2x1xf32>
      %178 = vector.broadcast %177 : vector<2x1xf32> to vector<2x32xf32>
      %179 = arith.subf %173, %178 : vector<2x32xf32>
      %180 = arith.mulf %179, %179 : vector<2x32xf32>
      %cst_101 = arith.constant dense<0.000000e+00> : vector<2xf32>
      %181 = vector.multi_reduction <add>, %180, %cst_101 [1] : vector<2x32xf32> to vector<2xf32>
      %182 = vector.shape_cast %181 : vector<2xf32> to vector<2x1xf32>
      %cst_102 = arith.constant 3.200000e+01 : f32
      %183 = vector.broadcast %cst_102 : f32 to vector<2x1xf32>
      %184 = arith.divf %182, %183 : vector<2x1xf32>
      %185 = vector.broadcast %177 : vector<2x1xf32> to vector<2x32xf32>
      %186 = arith.subf %173, %185 : vector<2x32xf32>
      %cst_103 = arith.constant 9.99999996E-13 : f32
      %187 = vector.broadcast %cst_103 : f32 to vector<2x1xf32>
      %188 = arith.addf %184, %187 : vector<2x1xf32>
      %189 = math.rsqrt %188 : vector<2x1xf32>
      %190 = vector.broadcast %189 : vector<2x1xf32> to vector<2x32xf32>
      %191 = arith.mulf %186, %190 : vector<2x32xf32>
      %192 = vector.broadcast %9 : vector<1x32xf32> to vector<2x32xf32>
      %193 = arith.mulf %191, %192 : vector<2x32xf32>
      %194 = vector.broadcast %10 : vector<1x32xf32> to vector<2x32xf32>
      %195 = arith.addf %193, %194 : vector<2x32xf32>
      %c0_104 = arith.constant 0 : index
      %c0_105 = arith.constant 0 : index
      %196 = vector.load %arg3[%c0_104, %c0_105] : memref<3x32xf32, #tpu.memory_space<vmem>>, vector<3x32xf32>
      %c0_106 = arith.constant 0 : index
      %c0_107 = arith.constant 0 : index
      %197 = vector.load %arg4[%c0_106, %c0_107] : memref<32x32xbf16, #tpu.memory_space<vmem>>, vector<32x32xbf16>
      %198 = arith.truncf %195 : vector<2x32xf32> to vector<2x32xbf16>
      %cst_108 = arith.constant dense<0.000000e+00> : vector<2x32xf32>
      %199 = tpu.matmul %198, %197, %cst_108 {dimension_numbers = #tpu.dot_dimension_numbers<[1], [0], [0], [1], [0, 0, 1, 1], [], []>} : vector<2x32xbf16>, vector<32x32xbf16>, vector<2x32xf32> -> vector<2x32xf32>
      %200 = vector.extract_strided_slice %196 {offsets = [2, 0], sizes = [1, 32], strides = [1, 1]} : vector<3x32xf32> to vector<1x32xf32>
      %201 = vector.broadcast %200 : vector<1x32xf32> to vector<2x32xf32>
      %202 = arith.addf %199, %201 : vector<2x32xf32>
      %203 = math.tanh %202 : vector<2x32xf32>
      %c0_109 = arith.constant 0 : index
      %c0_110 = arith.constant 0 : index
      %204 = vector.load %arg12[%c0_109, %c0_110] : memref<2x32xf32, #tpu.memory_space<vmem>>, vector<2x32xf32>
      tpu.vector_store %arg12[%c0_109, %c0_110], %203 {strides = array<i32>} : memref<2x32xf32, #tpu.memory_space<vmem>>, vector<2x32xf32>,
    } else {
    }
    return
  }
  func.func @transform_0(%arg0: i32) -> (i32, i32) {
    %c0_i32 = arith.constant 0 : i32
    %c0_i32_0 = arith.constant 0 : i32
    %c0_i32_1 = arith.constant 0 : i32
    return %c0_i32, %c0_i32_0 : i32, i32
  }
  func.func @transform_1(%arg0: i32) -> (i32, i32, i32) {
    %c0_i32 = arith.constant 0 : i32
    %c0_i32_0 = arith.constant 0 : i32
    %c0_i32_1 = arith.constant 0 : i32
    %c0_i32_2 = arith.constant 0 : i32
    return %c0_i32, %c0_i32_0, %c0_i32_1 : i32, i32, i32
  }
  func.func @transform_2(%arg0: i32) -> (i32, i32) {
    %c0_i32 = arith.constant 0 : i32
    %c0_i32_0 = arith.constant 0 : i32
    %c0_i32_1 = arith.constant 0 : i32
    return %c0_i32, %c0_i32_0 : i32, i32
  }
  func.func @transform_3(%arg0: i32) -> (i32, i32) {
    %c0_i32 = arith.constant 0 : i32
    %c0_i32_0 = arith.constant 0 : i32
    %c0_i32_1 = arith.constant 0 : i32
    return %c0_i32, %c0_i32_0 : i32, i32
  }
  func.func @transform_4(%arg0: i32) -> (i32, i32, i32, i32) {
    %c0_i32 = arith.constant 0 : i32
    %c0_i32_0 = arith.constant 0 : i32
    %c0_i32_1 = arith.constant 0 : i32
    %c0_i32_2 = arith.constant 0 : i32
    return %arg0, %c0_i32, %c0_i32_0, %c0_i32_1 : i32, i32, i32, i32
  }
  func.func @transform_5(%arg0: i32) -> (i32, i32, i32, i32) {
    %c0_i32 = arith.constant 0 : i32
    %c0_i32_0 = arith.constant 0 : i32
    %c0_i32_1 = arith.constant 0 : i32
    %c0_i32_2 = arith.constant 0 : i32
    return %arg0, %c0_i32, %c0_i32_0, %c0_i32_1 : i32, i32, i32, i32
  }
  func.func @transform_6(%arg0: i32) -> (i32, i32, i32, i32) {
    %c0_i32 = arith.constant 0 : i32
    %c0_i32_0 = arith.constant 0 : i32
    %c0_i32_1 = arith.constant 0 : i32
    %c0_i32_2 = arith.constant 0 : i32
    return %arg0, %c0_i32, %c0_i32_0, %c0_i32_1 : i32, i32, i32, i32
  }
  func.func @transform_7(%arg0: i32) -> (i32, i32, i32) {
    %c0_i32 = arith.constant 0 : i32
    %c0_i32_0 = arith.constant 0 : i32
    %c0_i32_1 = arith.constant 0 : i32
    return %arg0, %c0_i32, %c0_i32_0 : i32, i32, i32
  }
  func.func @transform_8(%arg0: i32) -> (i32, i32, i32) {
    %c0_i32 = arith.constant 0 : i32
    %c0_i32_0 = arith.constant 0 : i32
    %c0_i32_1 = arith.constant 0 : i32
    return %arg0, %c0_i32, %c0_i32_0 : i32, i32, i32
  }
  func.func @transform_9(%arg0: i32) -> (i32, i32, i32) {
    %c0_i32 = arith.constant 0 : i32
    %c0_i32_0 = arith.constant 0 : i32
    %c0_i32_1 = arith.constant 0 : i32
    return %arg0, %c0_i32, %c0_i32_0 : i32, i32, i32
  }
  func.func @transform_10(%arg0: i32) -> (i32, i32, i32) {
    %c0_i32 = arith.constant 0 : i32
    %c0_i32_0 = arith.constant 0 : i32
    %c0_i32_1 = arith.constant 0 : i32
    return %arg0, %c0_i32, %c0_i32_0 : i32, i32, i32
  }
  func.func @transform_11(%arg0: i32) -> (i32, i32) {
    %c0_i32 = arith.constant 0 : i32
    %c0_i32_0 = arith.constant 0 : i32
    %c0_i32_1 = arith.constant 0 : i32
    return %c0_i32, %c0_i32_0 : i32, i32
  }
}

</mosaic_0001>

<bundles_post_ra>
// kernel: bert_sentence_encoder.1
= control target key start
LH: loop header
LB: loop body
LE: loop exit
PB: predicated region body
PF: predicated region fallthrough
CT: control target
= control target key end

     0   :  { %s3035_s0 = inlined_call_operand.vmem [shape: f32[16,32], index: 0, kind: input, shape index: {}]   ;;  %s3036_s1 = inlined_call_operand.vmem [shape: f32[2,1,8], index: 1, kind: input, shape index: {}]   ;;  %s3037_s2 = inlined_call_operand.vmem [shape: f32[3,32], index: 2, kind: input, shape index: {}]   ;;  %s3038_s3 = inlined_call_operand.vmem [shape: bf16[32,32], index: 3, kind: input, shape index: {}]   ;;  %s3039_s4 = inlined_call_operand.vmem [shape: bf16[2,6,32,16], index: 4, kind: input, shape index: {}]   ;;  %s3040_s5 = inlined_call_operand.vmem [shape: f32[2,6,1,16], index: 5, kind: input, shape index: {}]   ;;  %s3041_s6 = inlined_call_operand.vmem [shape: bf16[2,2,16,32], index: 6, kind: input, shape index: {}]   ;;  %s3042_s7 = inlined_call_operand.vmem [shape: f32[2,6,32], index: 7, kind: input, shape index: {}]   ;;  %s3043_s8 = inlined_call_operand.vmem [shape: bf16[2,32,64], index: 8, kind: input, shape index: {}]   ;;  %s3044_s9 = inlined_call_operand.vmem [shape: f32[2,1,64], index: 9, kind: input, shape index: {}]   ;;  %s3045_s10 = inlined_call_operand.vmem [shape: bf16[2,64,32], index: 10, kind: input, shape index: {}]   ;;  %s3046_s11 = inlined_call_operand.hbm [shape: f32[2,32], index: 11, kind: output, shape index: {}]  }
   0x1   :  { %3048 = sst [smem:[#allocation7_spill]] %s3039_s4 }
   0x2   :  { %3049 = sst [smem:[#allocation8_spill]] %s3041_s6 }
   0x3   :  { %16 = vsyncpa [#allocation4], 0  ;;  %s2720_s17 = smov 0  }
   0x4 LB: > { %3050 = sst [smem:[#allocation6_spill]] %s2654_s17  ;;  %s2726_s18 = sadd.s32 4294967295, %s2654_s17   ;;  %s2654_s17 = sphi %s2720_s17, %s22_s17  }
   0x5   : > { %p2198_p0 = scmp.ge.s32.totalorder %s2654_s17, 1  ;;  %p389_p1 = scmp.lt.s32.totalorder %s2654_s17, 3 }
   0x7   : > { %p390_p2 = pnand %p2198_p0, %p389_p1 }
   0x8   : > { %p450_p3 = scmp.lt.s32.totalorder (!%p390_p2), %s2726_s18, 1  ;;  %s3051_s6 = sld [smem:[#allocation8_spill]] (!%p390_p2) }
   0x9   : > { %393 = sbr.rel (%p390_p2) target bundleno = 4601 (0x11f9), region = 64  ;;  %s3052_s4 = sld [smem:[#allocation7_spill]] (!%p390_p2) }
   0xa   : > { %p2207_p4 = scmp.ne.s32.totalorder (!%p390_p2), %s2726_s18, 0 }
   0xe   : > { %s451_s19 = scalar_select %p450_p3, %s2726_s18, 1 }
  0x10   : > { %s2518_s20 = smul.u32 96, %s451_s19  ;;  %s2473_s21 = sshll.u32 %s451_s19, 4 }
  0x11   : > { %s2519_s22 = smul.u32 6, %s451_s19  ;;  %s2735_s25 = scalar_lea.vmem %s3051_s6, %s2473_s21 }
  0x12   : > { %s2740_s28 = scalar_lea.vmem %s3052_s4, %s2518_s20  ;;  %s2202_s29 = sshll.u32 %s451_s19, 3 }
  0x13   : > { %s2745_s13 = scalar_lea.vmem %s3040_s5, %s2519_s22  ;;  %s2750_s16 = scalar_lea.vmem %s3042_s7, %s2202_s29 }
  0x14   : > { %s2755_s24 = scalar_lea.vmem %s3043_s8, %s2473_s21  ;;  %s2760_s20 = scalar_lea.vmem %s3044_s9, %s451_s19 }
  0x15   : > { %s2475_s27 = sshll.u32 %s451_s19, 5  ;;  %485 = sbr.rel (%p2207_p4) target bundleno = 304 (0x130), region = 68 }
  0x16   : > { %s2765_s22 = scalar_lea.vmem %s3045_s10, %s2475_s27 }
  0x1a   : > { %v487_v0 = vld [vmem:[%s3035_s0] sm:$0xff]  ;;  %vm489_vm0 = vcmask 261120   ;;  %v488_v2 = vld [vmem:[%s3035_s0 + $0x8] sm:$0xff]  ;;  %v2656_v4 = vmov 32.0  }
  0x1b   : > { %v490_v1 = vsel %vm489_vm0, %v487_v0, 0.0  ;;  %v493_v3 = vsel %vm489_vm0, %v488_v2, 0.0  ;;  %2538 = vrcp.f32 %v2656_v4  ;;  %v486_v31 = vld [vmem:[%s3037_s2] sm:$0x7] }
  0x1c   : > { %491 = vadd.xlane.f32.xlu0 %v490_v1  ;;  %v541_v36 = vperm.slane %v486_v31, 0  ;;  %v544_v40 = vperm.slane %v486_v31, 1 }
  0x21   : > { %v2539_v5 = vpop.eup %2538 }
  0x22   : > { %v497_v6 = vmul.f32 32.0, %v2539_v5  ;;  %vm501_vm1 = vweird.f32 %v2539_v5 }
  0x24   : > { %494 = vadd.xlane.f32.xlu0 %v493_v3  ;;  %v498_v7 = vsub.f32 1.0, %v497_v6 }
  0x26   : > { %v499_v8 = vmul.f32 %v2539_v5, %v498_v7 }
  0x28   : > { %v500_v9 = vadd.f32 %v2539_v5, %v499_v8 }
  0x2a   : > { %v502_v10 = vsel %vm501_vm1, %v2539_v5, %v500_v9 }
  0x8f   : > { %v492_v11 = vpop.xlane.xlu0 %491 }
  0x90   : > { %v503_v12 = vmul.f32 %v502_v10, %v492_v11 }
  0x92   : > { %v505_v13 = vsub.f32 %v487_v0, %v503_v12 }
  0x94   : > { %v507_v14 = vmul.f32 %v505_v13, %v505_v13 }
  0x96   : > { %v509_v15 = vsel %vm489_vm0, %v507_v14, 0.0 }
  0x97   : > { %510 = vadd.xlane.f32.xlu1 %v509_v15  ;;  %v495_v16 = vpop.xlane.xlu0 %494 }
  0x98   : > { %v504_v17 = vmul.f32 %v502_v10, %v495_v16 }
  0x9a   : > { %v506_v18 = vsub.f32 %v488_v2, %v504_v17 }
  0x9c   : > { %v508_v19 = vmul.f32 %v506_v18, %v506_v18 }
  0x9e   : > { %v512_v20 = vsel %vm489_vm0, %v508_v19, 0.0 }
  0x9f   : > { %513 = vadd.xlane.f32.xlu1 %v512_v20 }
 0x10a   : > { %v511_v21 = vpop.xlane.xlu1 %510 }
 0x10b   : > { %v515_v22 = vmul.f32 %v511_v21, %v502_v10 }
 0x10d   : > { %v517_v23 = vadd.f32 1e-12, %v515_v22 }
 0x10f   : > { %2540 = vrsqrt.f32 %v517_v23  ;;  %vm525_vm3 = vweird.f32 %v517_v23 }
 0x112   : > { %v514_v24 = vpop.xlane.xlu1 %513 }
 0x113   : > { %v516_v25 = vmul.f32 %v514_v24, %v502_v10 }
 0x115   : > { %v2541_v26 = vpop.eup %2540  ;;  %v518_v27 = vadd.f32 1e-12, %v516_v25 }
 0x116   : > { %v520_v28 = vmul.f32 %v2541_v26, %v517_v23  ;;  %vm526_vm2 = vweird.f32 %v2541_v26 }
 0x117   : > { %2542 = vrsqrt.f32 %v518_v27  ;;  %vm527_vm4 = vmor %vm525_vm3, %vm526_vm2  ;;  %vm535_vm6 = vweird.f32 %v518_v27 }
 0x118   : > { %v521_v29 = vmul.f32 %v2541_v26, %v520_v28 }
 0x11a   : > { %v522_v30 = vmul.f32 0.5, %v521_v29 }
 0x11c   : > { %v523_v32 = vsub.f32 1.5, %v522_v30 }
 0x11d   : > { %v2543_v33 = vpop.eup %2542 }
 0x11e   : > { %v524_v34 = vmul.f32 %v2541_v26, %v523_v32  ;;  %v530_v35 = vmul.f32 %v2543_v33, %v518_v27  ;;  %vm536_vm5 = vweird.f32 %v2543_v33 }
 0x11f   : > { %vm537_vm7 = vmor %vm535_vm6, %vm536_vm5 }
 0x120   : > { %v528_v37 = vsel %vm527_vm4, %v2541_v26, %v524_v34  ;;  %v531_v38 = vmul.f32 %v2543_v33, %v530_v35 }
 0x121   : > { %v539_v39 = vmul.f32 %v528_v37, %v505_v13 }
 0x122   : > { %v532_v41 = vmul.f32 0.5, %v531_v38 }
 0x123   : > { %v542_v42 = vmul.f32 %v541_v36, %v539_v39 }
 0x124   : > { %v533_v43 = vsub.f32 1.5, %v532_v41 }
 0x125   : > { %v545_v44 = vadd.f32 %v544_v40, %v542_v42 }
 0x126   : > { %v534_v45 = vmul.f32 %v2543_v33, %v533_v43 }
 0x127   : > { %547 = vst.msk [vmem:[#allocation2] sm:$0xff] %vm489_vm0, %v545_v44 }
 0x128   : > { %v538_v46 = vsel %vm537_vm7, %v2543_v33, %v534_v45 }
 0x129   : > { %v540_v47 = vmul.f32 %v538_v46, %v506_v18 }
 0x12b   : > { %v543_v48 = vmul.f32 %v541_v36, %v540_v47 }
 0x12d   : > { %v546_v49 = vadd.f32 %v544_v40, %v543_v48 }
 0x12f   : > { %548 = vst.msk [vmem:[#allocation2 + $0x8] sm:$0xff] %vm489_vm0, %v546_v49 }
 0x130 PF: > { %v2784_v50 = vld [vmem:[%s2750_s16] sm:$0x3f]  ;;  %p2208_p5 = scmp.ge.s32.totalorder %s2726_s18, 1 }
 0x132   : > { %553 = sbr.rel (%p2208_p5) target bundleno = 2373 (0x945), region = 72 }
 0x137   : > { %v2479_v51 = vld [vmem:[%s2740_s28 + $0x28] sm:$0xff]  ;;  %v2478_v53 = vld [vmem:[%s2740_s28 + $0x20] sm:$0xff]  ;;  %vm585_vm8 = vcmask 261120   ;;  %vm681_vm9 = vcmask 130048   ;;  %vm720_vm10 = vcmask 64512   ;;  %v2486_v24 = vld [vmem:[%s2740_s28 + $0x38] sm:$0xff] }
 0x138   : > { %v2477_v52 = vld [vmem:[%s2740_s28 + $0x8] sm:$0xff]  ;;  %v2790_v54 = vld [vmem:[#allocation2] sm:$0xff]  ;;  %633 = vmatpush.bf16.msra.mxu1 %v2479_v51  ;;  %v2484_v25 = vld [vmem:[%s2740_s28 + $0x18] sm:$0xff]  ;;  %vm750_vm11 = vcmask 1043456   ;;  %vm1207_vm3 = vcmask 523264  }
 0x139   : > { %v2792_v55 = vld [vmem:[#allocation2 + $0x8] sm:$0xff]  ;;  %595 = vmatpush.bf16.msra.mxu0 %v2477_v52  ;;  %v2476_v56 = vld [vmem:[%s2740_s28] sm:$0xff]  ;;  %v2485_v26 = vld [vmem:[%s2740_s28 + $0x30] sm:$0xff] }
 0x13a   : > { %v2797_v57 = vpack.c.bf16 %v2792_v55, %v2790_v54  ;;  %v2544_v58 = vld [vmem:[%s2745_s13 + $0x2] ss:$0 sm:$0xff]  ;;  %v2545_v59 = vld [vmem:[%s2745_s13] ss:$0 sm:$0xff]  ;;  %v2481_v12 = vld [vmem:[%s2740_s28 + $0x48] sm:$0xff] }
 0x13b   : > { %669 = vmatpush.bf16.msra.mxu2 %v2481_v12  ;;  %v2480_v13 = vld [vmem:[%s2740_s28 + $0x40] sm:$0xff]  ;;  %v2483_v27 = vld [vmem:[%s2740_s28 + $0x10] sm:$0xff] }
 0x13c   : > { %634 = vmatpush.bf16.msra.mxu1 %v2478_v53  ;;  %v2816_v14 = vld [vmem:[%s3036_s1] ss:$0 sm:$0xff]  ;;  %v2821_v15 = vld [vmem:[%s3036_s1 + $0x1] ss:$0 sm:$0xff]  ;;  %v2548_v28 = vld [vmem:[%s2745_s13 + $0x4] ss:$0 sm:$0xff] }
 0x13d   : > { %596 = vmatpush.bf16.msra.mxu0 %v2476_v56  ;;  %v2549_v49 = vld [vmem:[%s2745_s13 + $0x3] ss:$0 sm:$0xff] }
 0x13f   : > { %2231 = vmatmul.msk.bf16.vlgmr.msra.gmra.mxu1 %vm585_vm8, %v2797_v57  ;;  %670 = vmatpush.bf16.msra.mxu2 %v2480_v13  ;;  %v2482_v13 = vld [vmem:[%s2735_s25] sm:$0xff] }
 0x140   : > { %2217 = vmatmul.msk.bf16.vlgmr.msra.gmra.mxu0 %vm585_vm8, %v2797_v57 }
 0x142   : > { %2245 = vmatmul.msk.bf16.vlgmr.msra.gmra.mxu2 %vm585_vm8, %v2797_v57 }
 0x1bc   : > { %v636_v60 = vpop.f32.mrf.mxu1 }
 0x1bd   : > { %v598_v61 = vpop.f32.mrf.mxu0  ;;  %v637_v62 = vadd.f32 %v2544_v58, %v636_v60  ;;  %v2550_v60 = vld [vmem:[%s2745_s13 + $0x1] ss:$0 sm:$0xff] }
 0x1be   : > { %v599_v63 = vadd.f32 %v2545_v59, %v598_v61 }
 0x1bf   : > { %v679_v0 = vpack.c.bf16 %v637_v62, %v637_v62 }
 0x1c0   : > { %v603_v1 = vmul.f32 0.25, %v599_v63 }
 0x1c1   : > { %v686_v2 = vsel %vm681_vm9, %v679_v0, 0 }
 0x1c2   : > { %695 = vmatpush.bf16.xpose.msra.mxu3 %v686_v2  ;;  %v677_v5 = vpack.c.bf16 %v603_v1, %v603_v1 }
 0x1c4   : > { %v638_v3 = vpop.f32.mrf.mxu1 }
 0x1c5   : > { %v600_v4 = vpop.f32.mrf.mxu0  ;;  %v639_v6 = vadd.f32 %v2544_v58, %v638_v3  ;;  %v672_v29 = vpop.f32.mrf.mxu2 }
 0x1c6   : > { %v601_v8 = vadd.f32 %v2545_v59, %v600_v4  ;;  %v673_v31 = vadd.f32 %v2548_v28, %v672_v29 }
 0x1c7   : > { %v680_v7 = vpack.c.bf16 %v639_v6, %v639_v6 }
 0x1c8   : > { %v604_v10 = vmul.f32 0.25, %v601_v8  ;;  %v745_v34 = vpack.c.bf16 %v673_v31, %v673_v31  ;;  %v2551_v31 = vld [vmem:[%s2745_s13 + $0x5] ss:$0 sm:$0xff] }
 0x1c9   : > { %2246 = vmatmul.msk.bf16.vlgmr.msra.gmra.mxu3 %vm681_vm9, %v677_v5  ;;  %v705_v9 = vsel %vm681_vm9, %v680_v7, 0 }
 0x1ca   : > { %714 = vmatpush.bf16.xpose.msrb.mxu0 %v705_v9  ;;  %v678_v11 = vpack.c.bf16 %v604_v10, %v604_v10  ;;  %817 = vmatpush.bf16.msrb.mxu3 %v2484_v25  ;;  %v752_v37 = vsel %vm750_vm11, %v745_v34, 0 }
 0x1cb   : > { %761 = vmatpush.bf16.msrb.mxu1 %v752_v37 }
 0x1cd   : > { %v674_v39 = vpop.f32.mrf.mxu2 }
 0x1ce   : > { %818 = vmatpush.bf16.msrb.mxu3 %v2483_v27  ;;  %v675_v40 = vadd.f32 %v2548_v28, %v674_v39 }
 0x1d0   : > { %v746_v41 = vpack.c.bf16 %v675_v40, %v675_v40 }
 0x1d1   : > { %2247 = vmatmul.msk.bf16.vlgmr.msrb.gmra.mxu0 %vm681_vm9, %v678_v11 }
 0x1d2   : > { %855 = vmatpush.bf16.msra.mxu0 %v2486_v24  ;;  %v771_v44 = vsel %vm750_vm11, %v746_v41, 0 }
 0x1d3   : > { %780 = vmatpush.bf16.msrb.mxu2 %v771_v44 }
 0x1d6   : > { %856 = vmatpush.bf16.msra.mxu0 %v2485_v26 }
 0x1d9   : > { %2263 = vmatmul.msk.bf16.vlgmr.msrb.gmra.mxu3 %vm585_vm8, %v2797_v57 }
 0x1e1   : > { %2277 = vmatmul.msk.bf16.vlgmr.msra.gmra.mxu0 %vm585_vm8, %v2797_v57 }
 0x24c   : > { %v697_v16 = vpop.f32.mrf.mxu3 }
 0x24d   : > { %v698_v17 = vadd.f32 %v2816_v14, %v697_v16 }
 0x24e   : > { %v716_v18 = vpop.f32.mrf.mxu0 }
 0x24f   : > { %v717_v19 = vadd.f32 %v2821_v15, %v716_v18  ;;  %v721_v20 = vsel %vm720_vm10, %v698_v17, -inf }
 0x250   : > { %722 = vmax.xlane.f32.xlu1 %v721_v20  ;;  %v2487_v20 = vld [vmem:[%s2740_s28 + $0x50] sm:$0xff] }
 0x251   : > { %v724_v21 = vsel %vm720_vm10, %v717_v19, -inf }
 0x252   : > { %725 = vmax.xlane.f32.xlu0 %v724_v21 }
 0x254   : > { %v699_v22 = vpop.f32.mrf.mxu3 }
 0x256   : > { %v718_v23 = vpop.f32.mrf.mxu0 }
 0x25c   : > { %v820_v48 = vpop.f32.mrf.mxu3 }
 0x25d   : > { %v821_v10 = vadd.f32 %v2550_v60, %v820_v48 }
 0x25e   : > { %v858_v47 = vpop.f32.mrf.mxu0 }
 0x25f   : > { %v859_v52 = vadd.f32 %v2549_v49, %v858_v47  ;;  %v825_v11 = vmul.f32 0.25, %v821_v10 }
 0x261   : > { %v901_v56 = vpack.c.bf16 %v859_v52, %v859_v52  ;;  %v899_v12 = vpack.c.bf16 %v825_v11, %v825_v11 }
 0x263   : > { %v907_v59 = vsel %vm681_vm9, %v901_v56, 0 }
 0x264   : > { %916 = vmatpush.bf16.xpose.msra.mxu2 %v907_v59  ;;  %v822_v62 = vpop.f32.mrf.mxu3  ;;  %v2489_v59 = vld [vmem:[%s2735_s25 + $0x8] sm:$0xff] }
 0x265   : > { %v823_v63 = vadd.f32 %v2550_v60, %v822_v62 }
 0x266   : > { %v860_v51 = vpop.f32.mrf.mxu0 }
 0x267   : > { %v861_v53 = vadd.f32 %v2549_v49, %v860_v51  ;;  %v826_v0 = vmul.f32 0.25, %v823_v63 }
 0x269   : > { %v902_v58 = vpack.c.bf16 %v861_v53, %v861_v53  ;;  %v900_v1 = vpack.c.bf16 %v826_v0, %v826_v0 }
 0x26b   : > { %v926_v61 = vsel %vm681_vm9, %v902_v58, 0 }
 0x26c   : > { %935 = vmatpush.bf16.xpose.msra.mxu3 %v926_v61 }
 0x273   : > { %2293 = vmatmul.msk.bf16.vlgmr.msra.gmra.mxu3 %vm681_vm9, %v900_v1 }
 0x274   : > { %1048 = vmatpush.bf16.msrb.mxu3 %v2482_v13 }
 0x2c3   : > { %v723_v30 = vpop.xlane.xlu1 %722 }
 0x2c4   : > { %v727_v32 = vsub.f32 %v698_v17, %v723_v30 }
 0x2c5   : > { %v726_v33 = vpop.xlane.xlu0 %725 }
 0x2c6   : > { %v729_v35 = vmul.f32 1.442695, %v727_v32  ;;  %v728_v36 = vsub.f32 %v717_v19, %v726_v33  ;;  %v2488_v19 = vld [vmem:[%s2740_s28 + $0x58] sm:$0xff] }
 0x2c7   : > { %891 = vmatpush.bf16.msra.mxu1 %v2488_v19 }
 0x2c8   : > { %2553 = vpow2.f32 %v729_v35  ;;  %v731_v38 = vmul.f32 1.442695, %v728_v36 }
 0x2ca   : > { %2555 = vpow2.f32 %v731_v38 }
 0x2cb   : > { %892 = vmatpush.bf16.msra.mxu1 %v2487_v20 }
 0x2ce   : > { %v2554_v42 = vpop.eup %2553 }
 0x2cf   : > { %v733_v43 = vsel %vm720_vm10, %v2554_v42, 0.0 }
 0x2d0   : > { %v2556_v45 = vpop.eup %2555  ;;  %734 = vadd.xlane.f32.xlu1 %v733_v43 }
 0x2d1   : > { %v736_v46 = vsel %vm720_vm10, %v2556_v45, 0.0 }
 0x2d2   : > { %737 = vadd.xlane.f32.xlu0 %v736_v46 }
 0x2f6   : > { %v937_v16 = vpop.f32.mrf.mxu3 }
 0x2f7   : > { %v938_v28 = vadd.f32 %v2821_v15, %v937_v16  ;;  %v2657_v16 = vmov 32.0  }
 0x2f9   : > { %v944_v30 = vsel %vm720_vm10, %v938_v28, -inf }
 0x2fe   : > { %v939_v17 = vpop.f32.mrf.mxu3 }
 0x343   : > { %v735_v2 = vpop.xlane.xlu1 %734 }
 0x344   : > { %2557 = vrcp.f32 %v735_v2  ;;  %v1055_v2 = vperm.slane %v2784_v50, 0 }
 0x345   : > { %v738_v3 = vpop.xlane.xlu0 %737 }
 0x346   : > { %2559 = vrcp.f32 %v738_v3 }
 0x34a   : > { %v2558_v4 = vpop.eup %2557 }
 0x34b   : > { %v741_v5 = vmul.f32 %v2558_v4, %v2554_v42 }
 0x34c   : > { %v2560_v6 = vpop.eup %2559 }
 0x34d   : > { %v742_v7 = vmul.f32 %v2560_v6, %v2556_v45  ;;  %v743_v8 = vpack.c.bf16 %v741_v5, %v741_v5 }
 0x34f   : > { %2248 = vmatmul.msk.bf16.vlgmr.msrb.gmra.mxu1 %vm720_vm10, %v743_v8  ;;  %v744_v9 = vpack.c.bf16 %v742_v7, %v742_v7 }
 0x351   : > { %2249 = vmatmul.msk.bf16.vlgmr.msrb.gmra.mxu2 %vm720_vm10, %v744_v9 }
 0x352   : > { %1025 = vmatpush.bf16.msrb.mxu2 %v2489_v59 }
 0x35f   : > { %2291 = vmatmul.msk.bf16.vlgmr.msra.gmra.mxu1 %vm585_vm8, %v2797_v57 }
 0x361   : > { %2292 = vmatmul.msk.bf16.vlgmr.msra.gmra.mxu2 %vm681_vm9, %v899_v12 }
 0x3cc   : > { %v763_v18 = vpop.f32.mrf.mxu1 }
 0x3d4   : > { %v765_v21 = vpop.f32.mrf.mxu1  ;;  %v782_v22 = vpop.f32.mrf.mxu2 }
 0x3d5   : > { %v788_v23 = vpack.c.bf16 %v782_v22, %v763_v18 }
 0x3d7   : > { %2307 = vmatmul.msk.bf16.vlgmr.msrb.gmra.mxu3 %vm681_vm9, %v788_v23 }
 0x3dc   : > { %v784_v24 = vpop.f32.mrf.mxu2  ;;  %v894_v32 = vpop.f32.mrf.mxu1 }
 0x3dd   : > { %v895_v33 = vadd.f32 %v2551_v31, %v894_v32 }
 0x3df   : > { %v965_v34 = vpack.c.bf16 %v895_v33, %v895_v33 }
 0x3e1   : > { %v971_v57 = vsel %vm750_vm11, %v965_v34, 0  ;;  %v2490_v34 = vld [vmem:[%s2755_s24] sm:$0xff] }
 0x3e2   : > { %980 = vmatpush.bf16.msrb.mxu0 %v971_v57 }
 0x3e4   : > { %v918_v25 = vpop.f32.mrf.mxu2 }
 0x3e5   : > { %v919_v26 = vadd.f32 %v2816_v14, %v918_v25  ;;  %v896_v14 = vpop.f32.mrf.mxu1 }
 0x3e6   : > { %v897_v38 = vadd.f32 %v2551_v31, %v896_v14  ;;  %v2491_v31 = vld [vmem:[%s2755_s24 + $0x8] sm:$0xff] }
 0x3e7   : > { %v941_v27 = vsel %vm720_vm10, %v919_v26, -inf  ;;  %1147 = vmatpush.bf16.msra.mxu0 %v2491_v31 }
 0x3e8   : > { %942 = vmax.xlane.f32.xlu2 %v941_v27  ;;  %v966_v39 = vpack.c.bf16 %v897_v38, %v897_v38 }
 0x3ea   : > { %v990_v15 = vsel %vm750_vm11, %v966_v39, 0 }
 0x3eb   : > { %999 = vmatpush.bf16.msrb.mxu1 %v990_v15  ;;  %1148 = vmatpush.bf16.msra.mxu0 %v2490_v34 }
 0x3ec   : > { %v920_v29 = vpop.f32.mrf.mxu2 }
 0x3f0   : > { %945 = vmax.xlane.f32.xlu2 %v944_v30 }
 0x45a   : > { %v1050_v1 = vpop.f32.mrf.mxu3 }
 0x45b   : > { %v943_v35 = vpop.xlane.xlu2 %942 }
 0x45c   : > { %v947_v36 = vsub.f32 %v919_v26, %v943_v35 }
 0x45e   : > { %v949_v37 = vmul.f32 1.442695, %v947_v36 }
 0x460   : > { %2561 = vpow2.f32 %v949_v37 }
 0x462   : > { %v1052_v8 = vpop.f32.mrf.mxu3 }
 0x463   : > { %v946_v40 = vpop.xlane.xlu2 %945 }
 0x464   : > { %v948_v41 = vsub.f32 %v938_v28, %v946_v40 }
 0x466   : > { %v2562_v42 = vpop.eup %2561  ;;  %v951_v43 = vmul.f32 1.442695, %v948_v41 }
 0x467   : > { %v953_v44 = vsel %vm720_vm10, %v2562_v42, 0.0 }
 0x468   : > { %2563 = vpow2.f32 %v951_v43  ;;  %954 = vadd.xlane.f32.xlu0 %v953_v44 }
 0x46e   : > { %v2564_v45 = vpop.eup %2563 }
 0x46f   : > { %v956_v46 = vsel %vm720_vm10, %v2564_v45, 0.0 }
 0x470   : > { %957 = vadd.xlane.f32.xlu1 %v956_v46 }
 0x4db   : > { %v955_v47 = vpop.xlane.xlu0 %954 }
 0x4dc   : > { %2565 = vrcp.f32 %v955_v47 }
 0x4e2   : > { %v2566_v48 = vpop.eup %2565 }
 0x4e3   : > { %v961_v49 = vmul.f32 %v2566_v48, %v2562_v42  ;;  %v958_v51 = vpop.xlane.xlu1 %957  ;;  %v1111_v48 = vperm.slane %v2784_v50, 1 }
 0x4e4   : > { %2567 = vrcp.f32 %v958_v51 }
 0x4e5   : > { %v963_v52 = vpack.c.bf16 %v961_v49, %v961_v49  ;;  %2569 = vrcp.f32 %v2657_v16 }
 0x4e7   : > { %2294 = vmatmul.msk.bf16.vlgmr.msrb.gmra.mxu0 %vm720_vm10, %v963_v52 }
 0x4ea   : > { %v2568_v53 = vpop.eup %2567 }
 0x4eb   : > { %v962_v56 = vmul.f32 %v2568_v53, %v2564_v45  ;;  %v2570_v17 = vpop.eup %2569  ;;  %v1114_v53 = vperm.slane %v2784_v50, 2 }
 0x4ec   : > { %v1067_v18 = vmul.f32 32.0, %v2570_v17  ;;  %vm1071_vm12 = vweird.f32 %v2570_v17 }
 0x4ed   : > { %v964_v58 = vpack.c.bf16 %v962_v56, %v962_v56 }
 0x4ee   : > { %v1068_v19 = vsub.f32 1.0, %v1067_v18 }
 0x4ef   : > { %2295 = vmatmul.msk.bf16.vlgmr.msrb.gmra.mxu1 %vm720_vm10, %v964_v58 }
 0x4f0   : > { %v1069_v20 = vmul.f32 %v2570_v17, %v1068_v19 }
 0x564   : > { %v982_v60 = vpop.f32.mrf.mxu0 }
 0x56c   : > { %v984_v61 = vpop.f32.mrf.mxu0  ;;  %v1001_v62 = vpop.f32.mrf.mxu1 }
 0x56d   : > { %v1008_v63 = vpack.c.bf16 %v1001_v62, %v982_v60 }
 0x56f   : > { %2302 = vmatmul.msk.bf16.vlgmr.msrb.gmra.mxu2 %vm681_vm9, %v1008_v63  ;;  %v2495_v63 = vld [vmem:[%s2765_s22 + $0x18] sm:$0xff] }
 0x570   : > { %1215 = vmatpush.bf16.msra.mxu1 %v2495_v63 }
 0x574   : > { %v1003_v0 = vpop.f32.mrf.mxu1 }
 0x575   : > { %v2494_v0 = vld [vmem:[%s2765_s22 + $0x10] sm:$0xff] }
 0x576   : > { %1216 = vmatpush.bf16.msra.mxu1 %v2494_v0 }
 0x5f2   : > { %v1027_v3 = vpop.f32.mrf.mxu2 }
 0x5f3   : > { %v1051_v4 = vadd.f32 %v1050_v1, %v1027_v3  ;;  %v2493_v1 = vld [vmem:[%s2765_s22 + $0x8] sm:$0xff]  ;;  %v2552_v3 = vld [vmem:[%s2760_s20] ss:$0 sm:$0xff] }
 0x5f4   : > { %1217 = vmatpush.bf16.msra.mxu1 %v2493_v1  ;;  %v1274_v1 = vperm.slane %v2784_v50, 5 }
 0x5f5   : > { %v1056_v5 = vadd.f32 %v1055_v2, %v1051_v4 }
 0x5f7   : > { %v1058_v6 = vadd.f32 %v1056_v5, %v2790_v54  ;;  %v1070_v54 = vadd.f32 %v2570_v17, %v1069_v20 }
 0x5f9   : > { %v1060_v7 = vsel %vm585_vm8, %v1058_v6, 0.0  ;;  %v2872_v21 = vsel %vm1071_vm12, %v2570_v17, %v1070_v54 }
 0x5fa   : > { %1061 = vadd.xlane.f32.xlu2 %v1060_v7  ;;  %v1029_v9 = vpop.f32.mrf.mxu2 }
 0x5fb   : > { %v1053_v10 = vadd.f32 %v1052_v8, %v1029_v9 }
 0x5fd   : > { %v1057_v11 = vadd.f32 %v1055_v2, %v1053_v10  ;;  %v2492_v2 = vld [vmem:[%s2765_s22] sm:$0xff] }
 0x5fe   : > { %1218 = vmatpush.bf16.msra.mxu1 %v2492_v2 }
 0x5ff   : > { %v1059_v12 = vadd.f32 %v1057_v11, %v2792_v55 }
 0x601   : > { %v1063_v13 = vsel %vm585_vm8, %v1059_v12, 0.0 }
 0x602   : > { %1064 = vadd.xlane.f32.xlu0 %v1063_v13 }
 0x66d   : > { %v1062_v22 = vpop.xlane.xlu2 %1061 }
 0x66e   : > { %v1073_v23 = vmul.f32 %v2872_v21, %v1062_v22 }
 0x670   : > { %v1075_v24 = vsub.f32 %v1058_v6, %v1073_v23 }
 0x672   : > { %v1077_v55 = vmul.f32 %v1075_v24, %v1075_v24 }
 0x674   : > { %v1079_v25 = vsel %vm585_vm8, %v1077_v55, 0.0 }
 0x675   : > { %1080 = vadd.xlane.f32.xlu1 %v1079_v25  ;;  %v1065_v26 = vpop.xlane.xlu0 %1064 }
 0x676   : > { %v1074_v27 = vmul.f32 %v2872_v21, %v1065_v26 }
 0x678   : > { %v1076_v28 = vsub.f32 %v1059_v12, %v1074_v27 }
 0x67a   : > { %v1078_v29 = vmul.f32 %v1076_v28, %v1076_v28 }
 0x67c   : > { %v1082_v30 = vsel %vm585_vm8, %v1078_v29, 0.0 }
 0x67d   : > { %1083 = vadd.xlane.f32.xlu2 %v1082_v30 }
 0x6e8   : > { %v1081_v32 = vpop.xlane.xlu1 %1080 }
 0x6e9   : > { %v1085_v33 = vmul.f32 %v1081_v32, %v2872_v21 }
 0x6eb   : > { %v1087_v35 = vadd.f32 1e-12, %v1085_v33 }
 0x6ed   : > { %2571 = vrsqrt.f32 %v1087_v35  ;;  %vm1095_vm14 = vweird.f32 %v1087_v35 }
 0x6f0   : > { %v1084_v57 = vpop.xlane.xlu2 %1083 }
 0x6f1   : > { %v1086_v36 = vmul.f32 %v1084_v57, %v2872_v21 }
 0x6f3   : > { %v2572_v37 = vpop.eup %2571  ;;  %v1088_v14 = vadd.f32 1e-12, %v1086_v36 }
 0x6f4   : > { %v1090_v38 = vmul.f32 %v2572_v37, %v1087_v35  ;;  %vm1096_vm13 = vweird.f32 %v2572_v37 }
 0x6f5   : > { %2573 = vrsqrt.f32 %v1088_v14  ;;  %vm1097_vm15 = vmor %vm1095_vm14, %vm1096_vm13  ;;  %vm1105_vm1 = vweird.f32 %v1088_v14 }
 0x6f6   : > { %v1091_v39 = vmul.f32 %v2572_v37, %v1090_v38 }
 0x6f8   : > { %v1092_v40 = vmul.f32 0.5, %v1091_v39 }
 0x6fa   : > { %v1093_v15 = vsub.f32 1.5, %v1092_v40 }
 0x6fb   : > { %v2574_v41 = vpop.eup %2573 }
 0x6fc   : > { %v1094_v42 = vmul.f32 %v2572_v37, %v1093_v15  ;;  %v1100_v43 = vmul.f32 %v2574_v41, %v1088_v14  ;;  %vm1106_vm0 = vweird.f32 %v2574_v41 }
 0x6fd   : > { %vm1107_vm2 = vmor %vm1105_vm1, %vm1106_vm0 }
 0x6fe   : > { %v1101_v44 = vmul.f32 %v2574_v41, %v1100_v43  ;;  %v1098_v45 = vsel %vm1097_vm15, %v2572_v37, %v1094_v42 }
 0x6ff   : > { %v1109_v49 = vmul.f32 %v1098_v45, %v1075_v24 }
 0x700   : > { %v1102_v46 = vmul.f32 0.5, %v1101_v44 }
 0x701   : > { %v1112_v56 = vmul.f32 %v1111_v48, %v1109_v49 }
 0x702   : > { %v1103_v47 = vsub.f32 1.5, %v1102_v46 }
 0x703   : > { %v1115_v60 = vadd.f32 %v1114_v53, %v1112_v56 }
 0x704   : > { %v1104_v51 = vmul.f32 %v2574_v41, %v1103_v47 }
 0x706   : > { %v1108_v52 = vsel %vm1107_vm2, %v2574_v41, %v1104_v51 }
 0x707   : > { %v1110_v58 = vmul.f32 %v1108_v52, %v1076_v28  ;;  %v1182_v28 = vperm.slane %v2784_v50, 3 }
 0x709   : > { %v1113_v59 = vmul.f32 %v1111_v48, %v1110_v58 }
 0x70b   : > { %v1116_v61 = vadd.f32 %v1114_v53, %v1113_v59 }
 0x70d   : > { %v1121_v62 = vpack.c.bf16 %v1116_v61, %v1115_v60 }
 0x70f   : > { %2316 = vmatmul.msk.bf16.vlgmr.msra.gmra.mxu0 %vm585_vm8, %v1121_v62  ;;  %v1271_v62 = vperm.slane %v2784_v50, 4 }
 0x78c   : > { %v1150_v4 = vpop.f32.mrf.mxu0 }
 0x78d   : > { %v1151_v5 = vadd.f32 %v2552_v3, %v1150_v4 }
 0x78f   : > { %v1157_v6 = vmul.f32 0.044715, %v1151_v5  ;;  %v1155_v23 = vmul.f32 0.5, %v1151_v5 }
 0x791   : > { %v1159_v7 = vmul.f32 %v1157_v6, %v1151_v5 }
 0x793   : > { %v1161_v8 = vmul.f32 %v1159_v7, %v1151_v5 }
 0x794   : > { %v1152_v9 = vpop.f32.mrf.mxu0 }
 0x795   : > { %v1163_v10 = vadd.f32 %v1161_v8, %v1151_v5  ;;  %v1153_v11 = vadd.f32 %v2552_v3, %v1152_v9 }
 0x797   : > { %v1158_v12 = vmul.f32 0.044715, %v1153_v11  ;;  %v1165_v13 = vmul.f32 0.7978846, %v1163_v10  ;;  %v1156_v24 = vmul.f32 0.5, %v1153_v11 }
 0x799   : > { %v1160_v16 = vmul.f32 %v1158_v12, %v1153_v11  ;;  %2575 = vtanh.f32 %v1165_v13 }
 0x79b   : > { %v1162_v17 = vmul.f32 %v1160_v16, %v1153_v11 }
 0x79d   : > { %v1164_v18 = vadd.f32 %v1162_v17, %v1153_v11 }
 0x79f   : > { %v1166_v19 = vmul.f32 0.7978846, %v1164_v18  ;;  %v2576_v20 = vpop.eup %2575 }
 0x7a0   : > { %v1169_v54 = vadd.f32 1.0, %v2576_v20 }
 0x7a1   : > { %2577 = vtanh.f32 %v1166_v19 }
 0x7a2   : > { %v1171_v25 = vmul.f32 %v1169_v54, %v1155_v23 }
 0x7a7   : > { %v2578_v22 = vpop.eup %2577 }
 0x7a8   : > { %v1170_v55 = vadd.f32 1.0, %v2578_v22 }
 0x7aa   : > { %v1172_v26 = vmul.f32 %v1170_v55, %v1156_v24 }
 0x7ac   : > { %v1181_v27 = vpack.c.bf16 %v1172_v26, %v1171_v25 }
 0x7ae   : > { %2333 = vmatmul.msk.bf16.vlgmr.msra.gmra.mxu1 %vm1207_vm3, %v1181_v27 }
 0x82b   : > { %v1220_v29 = vpop.f32.mrf.mxu1 }
 0x82c   : > { %v1221_v30 = vadd.f32 %v1220_v29, %v1182_v28 }
 0x82e   : > { %v1225_v31 = vadd.f32 %v1221_v30, %v1115_v60 }
 0x830   : > { %v1227_v32 = vsel %vm585_vm8, %v1225_v31, 0.0 }
 0x831   : > { %1228 = vadd.xlane.f32.xlu0 %v1227_v32 }
 0x833   : > { %v1222_v33 = vpop.f32.mrf.mxu1 }
 0x834   : > { %v1223_v34 = vadd.f32 %v1222_v33, %v1182_v28 }
 0x836   : > { %v1226_v35 = vadd.f32 %v1223_v34, %v1116_v61 }
 0x838   : > { %v1230_v57 = vsel %vm585_vm8, %v1226_v35, 0.0 }
 0x839   : > { %1231 = vadd.xlane.f32.xlu1 %v1230_v57 }
 0x8a4   : > { %v1229_v36 = vpop.xlane.xlu0 %1228 }
 0x8a5   : > { %v1233_v37 = vmul.f32 %v1229_v36, %v2872_v21 }
 0x8a7   : > { %v1235_v14 = vsub.f32 %v1225_v31, %v1233_v37 }
 0x8a9   : > { %v1237_v38 = vmul.f32 %v1235_v14, %v1235_v14 }
 0x8ab   : > { %v1239_v39 = vsel %vm585_vm8, %v1237_v38, 0.0 }
 0x8ac   : > { %v1232_v40 = vpop.xlane.xlu1 %1231  ;;  %1240 = vadd.xlane.f32.xlu2 %v1239_v39 }
 0x8ad   : > { %v1234_v15 = vmul.f32 %v1232_v40, %v2872_v21 }
 0x8af   : > { %v1236_v41 = vsub.f32 %v1226_v35, %v1234_v15 }
 0x8b1   : > { %v1238_v42 = vmul.f32 %v1236_v41, %v1236_v41 }
 0x8b3   : > { %v1242_v43 = vsel %vm585_vm8, %v1238_v42, 0.0 }
 0x8b4   : > { %1243 = vadd.xlane.f32.xlu0 %v1242_v43 }
 0x91f   : > { %v1241_v44 = vpop.xlane.xlu2 %1240 }
 0x920   : > { %v1245_v45 = vmul.f32 %v1241_v44, %v2872_v21 }
 0x922   : > { %v1247_v46 = vadd.f32 1e-12, %v1245_v45 }
 0x924   : > { %2579 = vrsqrt.f32 %v1247_v46  ;;  %vm1255_vm5 = vweird.f32 %v1247_v46 }
 0x927   : > { %v1244_v47 = vpop.xlane.xlu0 %1243 }
 0x928   : > { %v1246_v48 = vmul.f32 %v1244_v47, %v2872_v21 }
 0x92a   : > { %v2580_v49 = vpop.eup %2579  ;;  %v1248_v51 = vadd.f32 1e-12, %v1246_v48 }
 0x92b   : > { %v1250_v52 = vmul.f32 %v2580_v49, %v1247_v46  ;;  %vm1256_vm4 = vweird.f32 %v2580_v49 }
 0x92c   : > { %2581 = vrsqrt.f32 %v1248_v51  ;;  %vm1257_vm6 = vmor %vm1255_vm5, %vm1256_vm4  ;;  %vm1265_vm9 = vweird.f32 %v1248_v51 }
 0x92d   : > { %v1251_v53 = vmul.f32 %v2580_v49, %v1250_v52 }
 0x92f   : > { %v1252_v56 = vmul.f32 0.5, %v1251_v53 }
 0x931   : > { %v1253_v58 = vsub.f32 1.5, %v1252_v56 }
 0x932   : > { %v2582_v59 = vpop.eup %2581 }
 0x933   : > { %v1254_v60 = vmul.f32 %v2580_v49, %v1253_v58  ;;  %v1260_v61 = vmul.f32 %v2582_v59, %v1248_v51  ;;  %vm1266_vm7 = vweird.f32 %v2582_v59 }
 0x934   : > { %vm1267_vm10 = vmor %vm1265_vm9, %vm1266_vm7 }
 0x935   : > { %v1258_v63 = vsel %vm1257_vm6, %v2580_v49, %v1254_v60  ;;  %v1261_v0 = vmul.f32 %v2582_v59, %v1260_v61 }
 0x936   : > { %v1269_v21 = vmul.f32 %v1258_v63, %v1235_v14 }
 0x937   : > { %v1262_v2 = vmul.f32 0.5, %v1261_v0 }
 0x938   : > { %v1272_v3 = vmul.f32 %v1271_v62, %v1269_v21 }
 0x939   : > { %v1263_v4 = vsub.f32 1.5, %v1262_v2 }
 0x93a   : > { %v1275_v5 = vadd.f32 %v1274_v1, %v1272_v3 }
 0x93b   : > { %v1264_v6 = vmul.f32 %v2582_v59, %v1263_v4 }
 0x93c   : > { %1277 = vst.msk [vmem:[#allocation2] sm:$0xff] %vm585_vm8, %v1275_v5 }
 0x93d   : > { %v1268_v7 = vsel %vm1267_vm10, %v2582_v59, %v1264_v6 }
 0x93e   : > { %v1270_v8 = vmul.f32 %v1268_v7, %v1236_v41 }
 0x940   : > { %v1273_v9 = vmul.f32 %v1271_v62, %v1270_v8 }
 0x942   : > { %v1276_v10 = vadd.f32 %v1274_v1, %v1273_v9 }
 0x944   : > { %1278 = vst.msk [vmem:[#allocation2 + $0x8] sm:$0xff] %vm585_vm8, %v1276_v10 }
 0x945 PF: > { %p2334_p6 = scmp.ne.s32.totalorder %s2726_s18, 1 }
 0x947   : > { %1282 = sbr.rel (%p2334_p6) target bundleno = 4596 (0x11f4), region = 76 }
 0x94c   : > { %v2499_v11 = vld [vmem:[%s2740_s28 + $0x28] sm:$0xff]  ;;  %v2498_v13 = vld [vmem:[%s2740_s28 + $0x20] sm:$0xff]  ;;  %vm1303_vm8 = vcmask 1041409   ;;  %vm1318_vm11 = vcmask 261120   ;;  %vm1418_vm12 = vcmask 130048   ;;  %v2504_v33 = vld [vmem:[%s2740_s28 + $0x18] sm:$0xff] }
 0x94d   : > { %v2497_v12 = vld [vmem:[%s2740_s28 + $0x8] sm:$0xff]  ;;  %v2907_v16 = vld [vmem:[#allocation2] sm:$0xff]  ;;  %1367 = vmatpush.bf16.msra.mxu1 %v2499_v11  ;;  %v2503_v57 = vld [vmem:[%s2740_s28 + $0x10] sm:$0xff]  ;;  %vm1457_vm13 = vcmask 57344   ;;  %vm1488_vm14 = vcmask 1043456   ;;  %vm1484_vm15 = vcmask 64512  }
 0x94e   : > { %v2909_v17 = vld [vmem:[#allocation2 + $0x8] sm:$0xff]  ;;  %1328 = vmatpush.bf16.msra.mxu0 %v2497_v12  ;;  %v2496_v18 = vld [vmem:[%s2740_s28] sm:$0xff]  ;;  %v1287_v19 = vpack.c.bf16 %v2907_v16, %v2907_v16  ;;  %v2506_v40 = vld [vmem:[%s2740_s28 + $0x38] sm:$0xff]  ;;  %vm1821_vm0 = vcmask 254976   ;;  %vm1961_vm5 = vcmask 523264  }
 0x94f   : > { %v1288_v20 = vpack.c.bf16 %v2909_v17, %v2909_v17  ;;  %v2918_v23 = vpack.c.bf16 %v2909_v17, %v2907_v16  ;;  %v2583_v26 = vld [vmem:[%s2745_s13 + $0x2] ss:$0 sm:$0xff]  ;;  %v2584_v27 = vld [vmem:[%s2745_s13] ss:$0 sm:$0xff]  ;;  %v2505_v42 = vld [vmem:[%s2740_s28 + $0x30] sm:$0xff] }
 0x950   : > { %v1300_v54 = vunpack.c.l.b16 %v1287_v19  ;;  %v2940_v44 = vld [vmem:[%s3036_s1] sm:$0x1]  ;;  %v1286_v46 = vld [vmem:[%s3036_s1 + $0x1] sm:$0x1]  ;;  %v2501_v53 = vld [vmem:[%s2740_s28 + $0x48] sm:$0xff] }
 0x951   : > { %v1301_v22 = vunpack.c.l.b16 %v1288_v20  ;;  %1368 = vmatpush.bf16.msra.mxu1 %v2498_v13  ;;  %1403 = vmatpush.bf16.msra.mxu2 %v2501_v53  ;;  %v2500_v58 = vld [vmem:[%s2740_s28 + $0x40] sm:$0xff] }
 0x952   : > { %1329 = vmatpush.bf16.msra.mxu0 %v2496_v18  ;;  %v2585_v61 = vld [vmem:[%s2745_s13 + $0x3] ss:$0 sm:$0xff]  ;;  %v2586_v0 = vld [vmem:[%s2745_s13 + $0x1] ss:$0 sm:$0xff] }
 0x953   : > { %v1302_v24 = vrot.slane %v1301_v22, 7  ;;  %v2502_v53 = vld [vmem:[%s2735_s25] sm:$0xff] }
 0x954   : > { %2357 = vmatmul.msk.bf16.vlgmr.msra.gmra.mxu1 %vm1318_vm11, %v2918_v23 }
 0x955   : > { %v1304_v55 = vsel %vm1303_vm8, %v1302_v24, %v1300_v54  ;;  %1404 = vmatpush.bf16.msra.mxu2 %v2500_v58  ;;  %v2587_v24 = vld [vmem:[%s2745_s13 + $0x4] ss:$0 sm:$0xff] }
 0x956   : > { %v1305_v25 = vpack.c.b16 %v1304_v55, %v1304_v55 }
 0x958   : > { %2343 = vmatmul.msk.bf16.vlgmr.msra.gmra.mxu0 %vm1318_vm11, %v1305_v25  ;;  %2371 = vmatmul.msk.bf16.vlgmr.msra.gmra.mxu2 %vm1318_vm11, %v2918_v23 }
 0x9d1   : > { %v1370_v28 = vpop.f32.mrf.mxu1 }
 0x9d2   : > { %v1371_v29 = vadd.f32 %v2583_v26, %v1370_v28 }
 0x9d4   : > { %v1416_v31 = vpack.c.bf16 %v1371_v29, %v1371_v29 }
 0x9d5   : > { %v1331_v30 = vpop.f32.mrf.mxu0 }
 0x9d6   : > { %v1332_v32 = vadd.f32 %v2584_v27, %v1331_v30  ;;  %v1423_v35 = vsel %vm1418_vm12, %v1416_v31, 0 }
 0x9d7   : > { %1432 = vmatpush.bf16.xpose.msra.mxu3 %v1423_v35 }
 0x9d8   : > { %v1335_v34 = vmul.f32 0.25, %v1332_v32 }
 0x9d9   : > { %v1372_v36 = vpop.f32.mrf.mxu1 }
 0x9da   : > { %v1414_v37 = vpack.c.bf16 %v1335_v34, %v1335_v34  ;;  %v1373_v14 = vadd.f32 %v2583_v26, %v1372_v36  ;;  %v1412_v15 = vrot.slane %v1335_v34, 1 }
 0x9db   : > { %v1406_v55 = vpop.f32.mrf.mxu2 }
 0x9dc   : > { %v1417_v39 = vpack.c.bf16 %v1373_v14, %v1373_v14  ;;  %v1415_v43 = vpack.c.bf16 %v1412_v15, %v1412_v15 }
 0x9dd   : > { %v1333_v38 = vpop.f32.mrf.mxu0 }
 0x9de   : > { %2372 = vmatmul.msk.bf16.vlgmr.msra.gmra.mxu3 %vm1418_vm12, %v1414_v37  ;;  %v1442_v41 = vsel %vm1418_vm12, %v1417_v39, 0  ;;  %v2508_v37 = vld [vmem:[%s2740_s28 + $0x58] sm:$0xff]  ;;  %v2507_v38 = vld [vmem:[%s2740_s28 + $0x50] sm:$0xff] }
 0x9df   : > { %1556 = vmatpush.bf16.msrb.mxu3 %v2504_v33  ;;  %1451 = vmatpush.bf16.xpose.msrb.mxu0 %v1442_v41 }
 0x9e3   : > { %1557 = vmatpush.bf16.msrb.mxu3 %v2503_v57  ;;  %v1408_v29 = vpop.f32.mrf.mxu2 }
 0x9e4   : > { %v1409_v30 = vadd.f32 %v2587_v24, %v1408_v29 }
 0x9e6   : > { %2373 = vmatmul.msk.bf16.vlgmr.msrb.gmra.mxu0 %vm1418_vm12, %v1415_v43  ;;  %v1483_v31 = vpack.c.bf16 %v1409_v30, %v1409_v30 }
 0x9e7   : > { %1592 = vmatpush.bf16.msra.mxu0 %v2506_v40 }
 0x9e8   : > { %v1509_v33 = vsel %vm1488_vm14, %v1483_v31, 0 }
 0x9e9   : > { %1518 = vmatpush.bf16.msrb.mxu2 %v1509_v33 }
 0x9eb   : > { %1593 = vmatpush.bf16.msra.mxu0 %v2505_v42 }
 0x9ee   : > { %2389 = vmatmul.msk.bf16.vlgmr.msrb.gmra.mxu3 %vm1318_vm11, %v1305_v25  ;;  %v1407_v25 = vadd.f32 %v2587_v24, %v1406_v55 }
 0x9f0   : > { %v1482_v26 = vpack.c.bf16 %v1407_v25, %v1407_v25 }
 0x9f2   : > { %v1490_v27 = vsel %vm1488_vm14, %v1482_v26, 0 }
 0x9f3   : > { %1499 = vmatpush.bf16.msrb.mxu1 %v1490_v27 }
 0x9f6   : > { %2403 = vmatmul.msk.bf16.vlgmr.msra.gmra.mxu0 %vm1318_vm11, %v2918_v23 }
 0x9f7   : > { %1628 = vmatpush.bf16.msra.mxu1 %v2508_v37 }
 0x9fb   : > { %1629 = vmatpush.bf16.msra.mxu1 %v2507_v38 }
 0xa61   : > { %v1434_v45 = vpop.f32.mrf.mxu3 }
 0xa62   : > { %v1435_v47 = vadd.f32 %v1434_v45, %v2940_v44 }
 0xa63   : > { %v1453_v48 = vpop.f32.mrf.mxu0 }
 0xa64   : > { %v1454_v49 = vadd.f32 %v1453_v48, %v1286_v46  ;;  %v1458_v51 = vsel %vm1457_vm13, %v1435_v47, -inf }
 0xa65   : > { %1459 = vmax.xlane.f32.xlu1 %v1458_v51 }
 0xa66   : > { %v1461_v52 = vsel %vm1457_vm13, %v1454_v49, -inf }
 0xa67   : > { %1462 = vmax.xlane.f32.xlu0 %v1461_v52 }
 0xa69   : > { %v1436_v56 = vpop.f32.mrf.mxu3 }
 0xa6b   : > { %v1455_v59 = vpop.f32.mrf.mxu0 }
 0xa71   : > { %v1559_v60 = vpop.f32.mrf.mxu3 }
 0xa72   : > { %v1560_v1 = vadd.f32 %v2586_v0, %v1559_v60 }
 0xa73   : > { %v1595_v62 = vpop.f32.mrf.mxu0 }
 0xa74   : > { %v1596_v63 = vadd.f32 %v2585_v61, %v1595_v62  ;;  %v1563_v4 = vmul.f32 0.25, %v1560_v1  ;;  %v2588_v1 = vld [vmem:[%s2745_s13 + $0x5] ss:$0 sm:$0xff] }
 0xa76   : > { %v1637_v7 = vrot.slane %v1563_v4, 1  ;;  %v1641_v28 = vpack.c.bf16 %v1596_v63, %v1596_v63 }
 0xa78   : > { %v1640_v8 = vpack.c.bf16 %v1637_v7, %v1637_v7  ;;  %v1647_v32 = vsel %vm1418_vm12, %v1641_v28, 0 }
 0xa79   : > { %v1561_v21 = vpop.f32.mrf.mxu3  ;;  %1656 = vmatpush.bf16.xpose.msra.mxu2 %v1647_v32 }
 0xa7b   : > { %v1597_v2 = vpop.f32.mrf.mxu0 }
 0xa7c   : > { %v1598_v3 = vadd.f32 %v2585_v61, %v1597_v2 }
 0xa7e   : > { %v1642_v5 = vpack.c.bf16 %v1598_v3, %v1598_v3 }
 0xa80   : > { %v1666_v6 = vsel %vm1418_vm12, %v1642_v5, 0 }
 0xa81   : > { %1675 = vmatpush.bf16.xpose.msra.mxu3 %v1666_v6 }
 0xa88   : > { %2419 = vmatmul.msk.bf16.vlgmr.msra.gmra.mxu3 %vm1418_vm12, %v1640_v8 }
 0xa89   : > { %1802 = vmatpush.bf16.msrb.mxu3 %v2502_v53 }
 0xad8   : > { %v1460_v9 = vpop.xlane.xlu1 %1459 }
 0xad9   : > { %v1464_v10 = vsub.f32 %v1435_v47, %v1460_v9 }
 0xada   : > { %v1463_v11 = vpop.xlane.xlu0 %1462 }
 0xadb   : > { %v1466_v12 = vmul.f32 1.442695, %v1464_v10  ;;  %v1465_v13 = vsub.f32 %v1454_v49, %v1463_v11 }
 0xadd   : > { %2590 = vpow2.f32 %v1466_v12  ;;  %v1468_v18 = vmul.f32 1.442695, %v1465_v13 }
 0xadf   : > { %2592 = vpow2.f32 %v1468_v18 }
 0xae3   : > { %v2591_v19 = vpop.eup %2590 }
 0xae4   : > { %v1470_v20 = vsel %vm1457_vm13, %v2591_v19, 0.0 }
 0xae5   : > { %v2593_v54 = vpop.eup %2592  ;;  %1471 = vadd.xlane.f32.xlu1 %v1470_v20 }
 0xae6   : > { %v1473_v22 = vsel %vm1457_vm13, %v2593_v54, 0.0 }
 0xae7   : > { %1474 = vadd.xlane.f32.xlu0 %v1473_v22 }
 0xb0b   : > { %v1677_v34 = vpop.f32.mrf.mxu3 }
 0xb0c   : > { %v1678_v35 = vadd.f32 %v1677_v34, %v1286_v46  ;;  %v1639_v46 = vpack.c.bf16 %v1563_v4, %v1563_v4 }
 0xb0e   : > { %v1684_v57 = vsel %vm1457_vm13, %v1678_v35, -inf }
 0xb0f   : > { %1685 = vmax.xlane.f32.xlu2 %v1684_v57 }
 0xb13   : > { %v1679_v36 = vpop.f32.mrf.mxu3 }
 0xb58   : > { %v1472_v14 = vpop.xlane.xlu1 %1471 }
 0xb59   : > { %2594 = vrcp.f32 %v1472_v14 }
 0xb5a   : > { %v1475_v39 = vpop.xlane.xlu0 %1474 }
 0xb5b   : > { %2596 = vrcp.f32 %v1475_v39 }
 0xb5f   : > { %v2595_v40 = vpop.eup %2594 }
 0xb60   : > { %v1478_v15 = vmul.f32 %v2595_v40, %v2591_v19 }
 0xb61   : > { %v2597_v41 = vpop.eup %2596 }
 0xb62   : > { %v1479_v42 = vmul.f32 %v2597_v41, %v2593_v54  ;;  %v1480_v43 = vpack.c.bf16 %v1478_v15, %v1478_v15 }
 0xb64   : > { %2374 = vmatmul.msk.bf16.vlgmr.msrb.gmra.mxu1 %vm1484_vm15, %v1480_v43  ;;  %v1481_v45 = vpack.c.bf16 %v1479_v42, %v1479_v42  ;;  %v1808_v42 = vperm.slane %v2784_v50, 0 }
 0xb66   : > { %2375 = vmatmul.msk.bf16.vlgmr.msrb.gmra.mxu2 %vm1484_vm15, %v1481_v45 }
 0xb74   : > { %2417 = vmatmul.msk.bf16.vlgmr.msra.gmra.mxu1 %vm1318_vm11, %v2918_v23 }
 0xb76   : > { %2418 = vmatmul.msk.bf16.vlgmr.msra.gmra.mxu2 %vm1418_vm12, %v1639_v46 }
 0xb82   : > { %v1686_v47 = vpop.xlane.xlu2 %1685 }
 0xb83   : > { %v1688_v48 = vsub.f32 %v1678_v35, %v1686_v47  ;;  %v2509_v35 = vld [vmem:[%s2735_s25 + $0x8] sm:$0xff] }
 0xb84   : > { %1773 = vmatpush.bf16.msrb.mxu2 %v2509_v35 }
 0xb85   : > { %v1691_v49 = vmul.f32 1.442695, %v1688_v48 }
 0xb87   : > { %2598 = vpow2.f32 %v1691_v49 }
 0xb8d   : > { %v2599_v51 = vpop.eup %2598 }
 0xb8e   : > { %v1696_v52 = vsel %vm1457_vm13, %v2599_v51, 0.0 }
 0xb8f   : > { %1697 = vadd.xlane.f32.xlu0 %v1696_v52 }
 0xbe1   : > { %v1501_v56 = vpop.f32.mrf.mxu1 }
 0xbe2   : > { %v1526_v60 = vpack.c.bf16 %v1501_v56, %v1501_v56 }
 0xbe4   : > { %v1781_v23 = vunpack.c.l.b16 %v1526_v60 }
 0xbe9   : > { %v1503_v58 = vpop.f32.mrf.mxu1  ;;  %v1520_v59 = vpop.f32.mrf.mxu2 }
 0xbea   : > { %v1527_v61 = vpack.c.bf16 %v1520_v59, %v1520_v59  ;;  %v2658_v58 = vmov 32.0  }
 0xbec   : > { %v1782_v62 = vunpack.c.l.b16 %v1527_v61 }
 0xbee   : > { %v1783_v63 = vrot.slane %v1782_v62, 7 }
 0xbf0   : > { %v1784_v0 = vsel %vm1303_vm8, %v1783_v63, %v1781_v23 }
 0xbf1   : > { %v1785_v21 = vpack.c.b16 %v1784_v0, %v1784_v0  ;;  %v1522_v2 = vpop.f32.mrf.mxu2  ;;  %v1631_v3 = vpop.f32.mrf.mxu1 }
 0xbf2   : > { %v1632_v4 = vadd.f32 %v2588_v1, %v1631_v3 }
 0xbf3   : > { %2433 = vmatmul.msk.bf16.vlgmr.msrb.gmra.mxu3 %vm1418_vm12, %v1785_v21 }
 0xbf4   : > { %v1705_v5 = vpack.c.bf16 %v1632_v4, %v1632_v4 }
 0xbf6   : > { %v1711_v6 = vsel %vm1488_vm14, %v1705_v5, 0 }
 0xbf7   : > { %1720 = vmatpush.bf16.msrb.mxu0 %v1711_v6 }
 0xbf9   : > { %v1658_v7 = vpop.f32.mrf.mxu2  ;;  %v1633_v8 = vpop.f32.mrf.mxu1 }
 0xbfa   : > { %v1659_v9 = vadd.f32 %v1658_v7, %v2940_v44  ;;  %v1634_v10 = vadd.f32 %v2588_v1, %v1633_v8  ;;  %v2511_v7 = vld [vmem:[%s2755_s24 + $0x8] sm:$0xff] }
 0xbfb   : > { %1911 = vmatpush.bf16.msra.mxu0 %v2511_v7 }
 0xbfc   : > { %v1681_v11 = vsel %vm1457_vm13, %v1659_v9, -inf  ;;  %v1706_v12 = vpack.c.bf16 %v1634_v10, %v1634_v10  ;;  %v2510_v10 = vld [vmem:[%s2755_s24] sm:$0xff] }
 0xbfd   : > { %1682 = vmax.xlane.f32.xlu2 %v1681_v11 }
 0xbfe   : > { %v1730_v13 = vsel %vm1488_vm14, %v1706_v12, 0 }
 0xbff   : > { %1739 = vmatpush.bf16.msrb.mxu1 %v1730_v13  ;;  %1912 = vmatpush.bf16.msra.mxu0 %v2510_v10 }
 0xc01   : > { %v1660_v18 = vpop.f32.mrf.mxu2 }
 0xc02   : > { %v1698_v19 = vpop.xlane.xlu0 %1697 }
 0xc03   : > { %2600 = vrcp.f32 %v1698_v19 }
 0xc09   : > { %v2601_v20 = vpop.eup %2600 }
 0xc0a   : > { %v1702_v54 = vmul.f32 %v2601_v20, %v2599_v51 }
 0xc0c   : > { %v1704_v22 = vpack.c.bf16 %v1702_v54, %v1702_v54 }
 0xc0e   : > { %2421 = vmatmul.msk.bf16.vlgmr.msrb.gmra.mxu1 %vm1484_vm15, %v1704_v22  ;;  %v1867_v22 = vperm.slane %v2784_v50, 1 }
 0xc70   : > { %v1683_v24 = vpop.xlane.xlu2 %1682 }
 0xc71   : > { %v1687_v55 = vsub.f32 %v1659_v9, %v1683_v24 }
 0xc73   : > { %v1689_v44 = vmul.f32 1.442695, %v1687_v55  ;;  %v1870_v55 = vperm.slane %v2784_v50, 2 }
 0xc75   : > { %2602 = vpow2.f32 %v1689_v44 }
 0xc76   : > { %v1804_v25 = vpop.f32.mrf.mxu3 }
 0xc7b   : > { %v2603_v26 = vpop.eup %2602 }
 0xc7c   : > { %v1693_v27 = vsel %vm1457_vm13, %v2603_v26, 0.0 }
 0xc7d   : > { %1694 = vadd.xlane.f32.xlu1 %v1693_v27 }
 0xc7e   : > { %v1806_v28 = vpop.f32.mrf.mxu3 }
 0xc8b   : > { %v1741_v29 = vpop.f32.mrf.mxu1 }
 0xc8c   : > { %v1749_v57 = vpack.c.bf16 %v1741_v29, %v1741_v29 }
 0xc8e   : > { %v1753_v36 = vunpack.c.l.b16 %v1749_v57 }
 0xc90   : > { %v1754_v38 = vrot.slane %v1753_v36, 7 }
 0xc93   : > { %v1743_v30 = vpop.f32.mrf.mxu1 }
 0xcf0   : > { %v1695_v31 = vpop.xlane.xlu1 %1694 }
 0xcf1   : > { %2604 = vrcp.f32 %v1695_v31 }
 0xcf2   : > { %2606 = vrcp.f32 %v2658_v58  ;;  %v1936_v58 = vperm.slane %v2784_v50, 3 }
 0xcf7   : > { %v2605_v32 = vpop.eup %2604 }
 0xcf8   : > { %v1701_v33 = vmul.f32 %v2605_v32, %v2603_v26  ;;  %v2607_v59 = vpop.eup %2606 }
 0xcf9   : > { %v1826_v60 = vmul.f32 32.0, %v2607_v59  ;;  %vm1830_vm1 = vweird.f32 %v2607_v59 }
 0xcfa   : > { %v1703_v34 = vpack.c.bf16 %v1701_v33, %v1701_v33 }
 0xcfb   : > { %v1827_v61 = vsub.f32 1.0, %v1826_v60 }
 0xcfc   : > { %2420 = vmatmul.msk.bf16.vlgmr.msrb.gmra.mxu0 %vm1484_vm15, %v1703_v34 }
 0xcfd   : > { %v1828_v62 = vmul.f32 %v2607_v59, %v1827_v61 }
 0xcff   : > { %v1829_v23 = vadd.f32 %v2607_v59, %v1828_v62 }
 0xd79   : > { %v1722_v37 = vpop.f32.mrf.mxu0 }
 0xd7a   : > { %v1748_v14 = vpack.c.bf16 %v1722_v37, %v1722_v37  ;;  %v2515_v37 = vld [vmem:[%s2765_s22 + $0x18] sm:$0xff] }
 0xd7b   : > { %1969 = vmatpush.bf16.msra.mxu1 %v2515_v37 }
 0xd7c   : > { %v1752_v39 = vunpack.c.l.b16 %v1748_v14  ;;  %v2514_v14 = vld [vmem:[%s2765_s22 + $0x10] sm:$0xff] }
 0xd7e   : > { %v1755_v40 = vsel %vm1303_vm8, %v1754_v38, %v1752_v39  ;;  %v2513_v38 = vld [vmem:[%s2765_s22 + $0x8] sm:$0xff]  ;;  %v2512_v39 = vld [vmem:[%s2765_s22] sm:$0xff] }
 0xd7f   : > { %v1756_v15 = vpack.c.b16 %v1755_v40, %v1755_v40  ;;  %1970 = vmatpush.bf16.msra.mxu1 %v2514_v14  ;;  %v2589_v40 = vld [vmem:[%s2760_s20] ss:$0 sm:$0xff] }
 0xd81   : > { %v1724_v41 = vpop.f32.mrf.mxu0  ;;  %2428 = vmatmul.msk.bf16.vlgmr.msrb.gmra.mxu2 %vm1418_vm12, %v1756_v15 }
 0xd83   : > { %1971 = vmatpush.bf16.msra.mxu1 %v2513_v38 }
 0xd87   : > { %1972 = vmatpush.bf16.msra.mxu1 %v2512_v39 }
 0xe04   : > { %v1775_v43 = vpop.f32.mrf.mxu2 }
 0xe05   : > { %v1805_v45 = vadd.f32 %v1804_v25, %v1775_v43 }
 0xe07   : > { %v1809_v46 = vadd.f32 %v1808_v42, %v1805_v45 }
 0xe09   : > { %v1811_v47 = vrot.slane %v1809_v46, 1  ;;  %v1814_v51 = vadd.f32 %v1809_v46, %v2907_v16 }
 0xe0b   : > { %v1815_v48 = vadd.f32 %v1811_v47, %v2909_v17  ;;  %v2990_v17 = vsel %vm1830_vm1, %v2607_v59, %v1829_v23 }
 0xe0c   : > { %v1777_v49 = vpop.f32.mrf.mxu2 }
 0xe0d   : > { %v1818_v52 = vrot.slane %v1815_v48, 7 }
 0xe0f   : > { %v1819_v53 = vsel %vm1303_vm8, %v1818_v52, %v1814_v51 }
 0xe10   : > { %v1822_v56 = vsel %vm1821_vm0, %v1819_v53, 0.0 }
 0xe11   : > { %1823 = vadd.xlane.f32.xlu2 %v1822_v56 }
 0xe84   : > { %v1824_v16 = vpop.xlane.xlu2 %1823 }
 0xe85   : > { %v1832_v63 = vmul.f32 %v2990_v17, %v1824_v16 }
 0xe87   : > { %v1834_v0 = vrot.slane %v1832_v63, 1  ;;  %v1837_v1 = vsub.f32 %v1814_v51, %v1832_v63 }
 0xe89   : > { %v1838_v21 = vsub.f32 %v1815_v48, %v1834_v0  ;;  %v1839_v3 = vmul.f32 %v1837_v1, %v1837_v1 }
 0xe8b   : > { %v1840_v2 = vmul.f32 %v1838_v21, %v1838_v21 }
 0xe8d   : > { %v1843_v4 = vrot.slane %v1840_v2, 7 }
 0xe8f   : > { %v1844_v5 = vsel %vm1303_vm8, %v1843_v4, %v1839_v3 }
 0xe90   : > { %v1846_v6 = vsel %vm1821_vm0, %v1844_v5, 0.0 }
 0xe91   : > { %1847 = vadd.xlane.f32.xlu0 %v1846_v6 }
 0xf04   : > { %v1848_v8 = vpop.xlane.xlu0 %1847 }
 0xf05   : > { %v1849_v9 = vmul.f32 %v1848_v8, %v2990_v17 }
 0xf07   : > { %v1850_v11 = vadd.f32 1e-12, %v1849_v9 }
 0xf09   : > { %2608 = vrsqrt.f32 %v1850_v11  ;;  %vm1857_vm3 = vweird.f32 %v1850_v11 }
 0xf0f   : > { %v2609_v12 = vpop.eup %2608 }
 0xf10   : > { %v1852_v13 = vmul.f32 %v2609_v12, %v1850_v11  ;;  %vm1858_vm2 = vweird.f32 %v2609_v12  ;;  %v2517_v11 = vld [vmem:[%s3038_s3 + $0x8] sm:$0xff] }
 0xf11   : > { %vm1859_vm4 = vmor %vm1857_vm3, %vm1858_vm2  ;;  %2069 = vmatpush.bf16.msra.mxu2 %v2517_v11 }
 0xf12   : > { %v1853_v18 = vmul.f32 %v2609_v12, %v1852_v13 }
 0xf14   : > { %v1854_v19 = vmul.f32 0.5, %v1853_v18  ;;  %v2516_v18 = vld [vmem:[%s3038_s3] sm:$0xff] }
 0xf15   : > { %2070 = vmatpush.bf16.msra.mxu2 %v2516_v18 }
 0xf16   : > { %v1855_v20 = vsub.f32 1.5, %v1854_v19 }
 0xf18   : > { %v1856_v54 = vmul.f32 %v2609_v12, %v1855_v20 }
 0xf1a   : > { %v1860_v24 = vsel %vm1859_vm4, %v2609_v12, %v1856_v54 }
 0xf1b   : > { %v1862_v44 = vrot.slane %v1860_v24, 1  ;;  %v1865_v25 = vmul.f32 %v1860_v24, %v1837_v1 }
 0xf1d   : > { %v1866_v26 = vmul.f32 %v1862_v44, %v1838_v21  ;;  %v1868_v27 = vmul.f32 %v1867_v22, %v1865_v25  ;;  %v2027_v25 = vperm.slane %v2784_v50, 4 }
 0xf1f   : > { %v1869_v28 = vmul.f32 %v1867_v22, %v1866_v26  ;;  %v1871_v29 = vadd.f32 %v1870_v55, %v1868_v27  ;;  %v2030_v26 = vperm.slane %v2784_v50, 5  ;;  %v2033_v50 = vld [vmem:[%s3037_s2] sm:$0x7] }
 0xf20   : > { %v2040_v39 = vperm.slane %v2033_v50, 2 }
 0xf21   : > { %v1872_v30 = vadd.f32 %v1870_v55, %v1869_v28  ;;  %v1877_v31 = vpack.c.bf16 %v1871_v29, %v1871_v29 }
 0xf23   : > { %v1878_v32 = vpack.c.bf16 %v1872_v30, %v1872_v30  ;;  %v1885_v34 = vunpack.c.l.b16 %v1877_v31 }
 0xf25   : > { %v1886_v33 = vunpack.c.l.b16 %v1878_v32 }
 0xf27   : > { %v1887_v35 = vrot.slane %v1886_v33, 7 }
 0xf29   : > { %v1888_v57 = vsel %vm1303_vm8, %v1887_v35, %v1885_v34 }
 0xf2a   : > { %v1889_v36 = vpack.c.b16 %v1888_v57, %v1888_v57 }
 0xf2c   : > { %2442 = vmatmul.msk.bf16.vlgmr.msra.gmra.mxu0 %vm1318_vm11, %v1889_v36 }
 0xfa9   : > { %v1914_v15 = vpop.f32.mrf.mxu0 }
 0xfaa   : > { %v1915_v41 = vadd.f32 %v2589_v40, %v1914_v15 }
 0xfac   : > { %v1919_v42 = vmul.f32 0.044715, %v1915_v41  ;;  %v1918_v51 = vmul.f32 0.5, %v1915_v41 }
 0xfae   : > { %v1920_v43 = vmul.f32 %v1919_v42, %v1915_v41 }
 0xfb0   : > { %v1921_v45 = vmul.f32 %v1920_v43, %v1915_v41 }
 0xfb1   : > { %v1916_v46 = vpop.f32.mrf.mxu0 }
 0xfb2   : > { %v1922_v47 = vadd.f32 %v1921_v45, %v1915_v41 }
 0xfb4   : > { %v1923_v48 = vmul.f32 0.7978846, %v1922_v47 }
 0xfb6   : > { %2610 = vtanh.f32 %v1923_v48 }
 0xfbc   : > { %v2611_v49 = vpop.eup %2610 }
 0xfbd   : > { %v1925_v52 = vadd.f32 1.0, %v2611_v49 }
 0xfbf   : > { %v1926_v53 = vmul.f32 %v1925_v52, %v1918_v51 }
 0xfc1   : > { %v1935_v56 = vpack.c.bf16 %v1926_v53, %v1926_v53 }
 0xfc3   : > { %2459 = vmatmul.msk.bf16.vlgmr.msra.gmra.mxu1 %vm1961_vm5, %v1935_v56 }
0x1040   : > { %v1974_v59 = vpop.f32.mrf.mxu1 }
0x1041   : > { %v1975_v60 = vadd.f32 %v1974_v59, %v1936_v58 }
0x1043   : > { %v1979_v61 = vrot.slane %v1975_v60, 1  ;;  %v1982_v23 = vadd.f32 %v1975_v60, %v1871_v29 }
0x1045   : > { %v1983_v62 = vadd.f32 %v1979_v61, %v1872_v30 }
0x1047   : > { %v1986_v16 = vrot.slane %v1983_v62, 7 }
0x1048   : > { %v1976_v63 = vpop.f32.mrf.mxu1 }
0x1049   : > { %v1987_v0 = vsel %vm1303_vm8, %v1986_v16, %v1982_v23 }
0x104a   : > { %v1989_v1 = vsel %vm1821_vm0, %v1987_v0, 0.0 }
0x104b   : > { %1990 = vadd.xlane.f32.xlu1 %v1989_v1 }
0x10be   : > { %v1991_v21 = vpop.xlane.xlu1 %1990 }
0x10bf   : > { %v1992_v2 = vmul.f32 %v1991_v21, %v2990_v17 }
0x10c1   : > { %v1994_v3 = vrot.slane %v1992_v2, 1  ;;  %v1997_v4 = vsub.f32 %v1982_v23, %v1992_v2 }
0x10c3   : > { %v1998_v5 = vsub.f32 %v1983_v62, %v1994_v3  ;;  %v1999_v7 = vmul.f32 %v1997_v4, %v1997_v4 }
0x10c5   : > { %v2000_v6 = vmul.f32 %v1998_v5, %v1998_v5 }
0x10c7   : > { %v2003_v8 = vrot.slane %v2000_v6, 7 }
0x10c9   : > { %v2004_v9 = vsel %vm1303_vm8, %v2003_v8, %v1999_v7 }
0x10ca   : > { %v2006_v10 = vsel %vm1821_vm0, %v2004_v9, 0.0 }
0x10cb   : > { %2007 = vadd.xlane.f32.xlu2 %v2006_v10 }
0x113e   : > { %v2008_v12 = vpop.xlane.xlu2 %2007 }
0x113f   : > { %v2009_v13 = vmul.f32 %v2008_v12, %v2990_v17 }
0x1141   : > { %v2010_v19 = vadd.f32 1e-12, %v2009_v13 }
0x1143   : > { %2612 = vrsqrt.f32 %v2010_v19  ;;  %vm2017_vm7 = vweird.f32 %v2010_v19 }
0x1149   : > { %v2613_v20 = vpop.eup %2612 }
0x114a   : > { %v2012_v54 = vmul.f32 %v2613_v20, %v2010_v19  ;;  %vm2018_vm6 = vweird.f32 %v2613_v20 }
0x114b   : > { %vm2019_vm9 = vmor %vm2017_vm7, %vm2018_vm6 }
0x114c   : > { %v2013_v22 = vmul.f32 %v2613_v20, %v2012_v54 }
0x114e   : > { %v2014_v24 = vmul.f32 0.5, %v2013_v22 }
0x1150   : > { %v2015_v55 = vsub.f32 1.5, %v2014_v24 }
0x1152   : > { %v2016_v44 = vmul.f32 %v2613_v20, %v2015_v55 }
0x1154   : > { %v2020_v17 = vsel %vm2019_vm9, %v2613_v20, %v2016_v44 }
0x1155   : > { %v2022_v27 = vrot.slane %v2020_v17, 1  ;;  %v2025_v28 = vmul.f32 %v2020_v17, %v1997_v4 }
0x1157   : > { %v2026_v29 = vmul.f32 %v2022_v27, %v1998_v5  ;;  %v2028_v30 = vmul.f32 %v2027_v25, %v2025_v28 }
0x1159   : > { %v2029_v31 = vmul.f32 %v2027_v25, %v2026_v29  ;;  %v2031_v32 = vadd.f32 %v2030_v26, %v2028_v30 }
0x115b   : > { %v2032_v33 = vadd.f32 %v2030_v26, %v2029_v31  ;;  %v2038_v34 = vpack.c.bf16 %v2031_v32, %v2031_v32 }
0x115d   : > { %v2039_v35 = vpack.c.bf16 %v2032_v33, %v2032_v33  ;;  %v2043_v36 = vunpack.c.l.b16 %v2038_v34 }
0x115f   : > { %v2044_v57 = vunpack.c.l.b16 %v2039_v35 }
0x1161   : > { %v2045_v37 = vrot.slane %v2044_v57, 7 }
0x1163   : > { %v2046_v14 = vsel %vm1303_vm8, %v2045_v37, %v2043_v36 }
0x1164   : > { %v2047_v38 = vpack.c.b16 %v2046_v14, %v2046_v14 }
0x1166   : > { %2468 = vmatmul.msk.bf16.vlgmr.msra.gmra.mxu2 %vm1318_vm11, %v2047_v38 }
0x11e9   : > { %v2072_v40 = vpop.f32.mrf.mxu2 }
0x11ea   : > { %v2073_v15 = vadd.f32 %v2072_v40, %v2040_v39 }
0x11ec   : > { %2614 = vtanh.f32 %v2073_v15 }
0x11f1   : > { %v2074_v41 = vpop.f32.mrf.mxu2 }
0x11f2   : > { %v2615_v42 = vpop.eup %2614 }
0x11f3   : > { %2077 = vst.msk [vmem:[#allocation3] sm:$0x3] %vm1821_vm0, %v2615_v42 }
0x11f4 PF: > { %p2524_p7 = scmp.eq.s32.totalorder %s2726_s18, 1  ;;  %s2659_s29 = smov [#allocation3]  }
0x11f5   : > { %s2084_s12 = sshll.u32 %s2659_s29, 4  ;;  %s2086_s4 = sshll.u32 %s3046_s11, 4  ;;  %s2085_s12 = int_to_ptr.vmem [resolvable:$true] %s2084_s12  ;;  %s2087_s4 = int_to_ptr.hbm [resolvable:$true] %s2086_s4 }
0x11f6   : > { %2521 = dma.vmem_to_hbm [thread:$0]  (%p2524_p7), %s2085_s12, 32, %s2087_s4, [#allocation4]  }
0x11f7   : > { %2649 = dma.done.wait (%p2524_p7), [#allocation4], 32  }
0x11f8   : > { %2651 = vsyncadd (%p2524_p7), [#allocation4], 4294967264 }
0x11f9 PF: > { %s3053_s19 = sld [smem:[#allocation6_spill]] }
0x11ff   : > { %s22_s17 = sadd.s32 1, %s3053_s19  }
0x1200   : > { %p19_p8 = scmp.ge.s32.totalorder %s22_s17, 4  }
0x1202   :  { %21 = sbr.rel (!%p19_p8) target bundleno = 4 (0x4), region = 143 }
0x1207   :  { %2100 = vsyncpa [#allocation4], 1 }
0x1208   :  { %2102 = vsyncpa [#allocation4 + $0x1], 1 }

</bundles_post_ra>
